<compile_context>
chip_gen: v5e
topology: v5e:2x2
jax: 0.10.0
libtpu: 0.0.40
codegen_flags: <defaults>
</compile_context>

<pallas_src>
import functools
import math

import jax
import jax.numpy as jnp
import numpy as np
from jax.experimental import pallas as pl
from jax.experimental.pallas import tpu as pltpu


# Small, deterministic config mirroring the nn.Module defaults (channels and
# style_dim shrunk so the example stays tiny).
CFG = dict(ic=3, n_layers=3, kernel=5, channels=8, downsample=2,
           blur=9, max_dx=5, max_dy=10, style_dim=32)

# Conservative per-call VMEM budget: fits v7x's 64 MiB physical VMEM with room
# for double-buffered inputs + outputs on all of v5e/v6e/v7x.
VMEM_LIMIT = 32 * 1024 * 1024

_PARAMS = lambda sem: pltpu.CompilerParams(dimension_semantics=sem,
                                           vmem_limit_bytes=VMEM_LIMIT)


def _hw_tile(hw, cap=512):
    """Largest multiple of 128 that divides hw and is <= cap (else hw itself).
    Keeps the per-tile footprint bounded while staying lane-aligned."""
    if hw <= cap:
        return hw
    best = None
    t = 128
    while t <= cap:
        if hw % t == 0:
            best = t
        t += 128
    return best if best is not None else hw


# ============================== Pallas kernels ==============================

def _conv_ws_kernel(p_ref, w_ref, b_ref, o_ref):
    """Weight-stationary im2col conv + bias + ReLU for one (batch, hw-tile).
    p_ref: (1, K*K*Cin, thw) bf16 patches (spatial on lanes)
    w_ref: (Cout, K*K*Cin)  bf16 weights
    b_ref: (Cout, 1)        f32 bias
    o_ref: (1, Cout, thw)   f32, lane-dense output
    Single fat matmul: contraction depth K*K*Cin (75 / 200) instead of 25 shallow
    dots; f32 accumulation on the MXU."""
    acc = jnp.dot(w_ref[...], p_ref[0], preferred_element_type=jnp.float32)
    o_ref[0] = jnp.maximum(acc + b_ref[...], 0.0)


def _pool_avg_kernel(*refs):
    """AvgPool window sum: refs = (corner_0..corner_{p*p-1}, inv_count, out),
    each block (1, 1, C*Ho*Wo) — pure VPU elementwise, lane-dense rows."""
    o_ref = refs[-1]
    inv_ref = refs[-2]
    acc = refs[0][0]
    for r in refs[1:-2]:
        acc = acc + r[0]
    o_ref[0] = acc * inv_ref[0]


def _pred_fused_kernel(f_ref, w1_ref, sb_ref, w2_ref, b2_ref, o_ref):
    """Fused pred_layer (1x1 conv -> ReLU -> 1x1 conv) for the interior pixels of
    one batch element, weight-stationary with spatial (M) on the lane axis.
    f_ref : (1, Cf, M) bf16   features
    w1_ref: (S, Cf)    bf16   pred1 feature weights
    sb_ref: (1, S, 1)  f32    per-batch bias  (pred1_ws @ style + pred1_b)
    w2_ref: (2, S)     bf16   pred2 weights
    b2_ref: (2, 1)     f32    pred2 bias
    o_ref : (1, 2, M)  f32    (dy, dx) prediction, lane-dense."""
    h = jnp.dot(w1_ref[...], f_ref[0], preferred_element_type=jnp.float32) + sb_ref[0]
    h = jnp.maximum(h, 0.0).astype(jnp.bfloat16)
    o_ref[0] = jnp.dot(w2_ref[...], h, preferred_element_type=jnp.float32) + b2_ref[...]


def _deform_field_kernel(scale_ref, pred_ref, ry_ref, rxt_ref, bh_ref, bwt_ref,
                         id_ref, o_ref, *, inv_blur_sq):
    """Per deformation field (grid step): bilinear resize (two matmuls) ->
    scale * tanh -> box blur (two band matmuls, exact zero-padded box) ->
    + identity grid.  Resize/blur matmuls use bf16 operands with f32 accumulation;
    tanh / scale / identity math stays f32."""
    s = scale_ref[pl.program_id(0)]
    t = jnp.dot(ry_ref[...], pred_ref[0].astype(jnp.bfloat16),
                preferred_element_type=jnp.float32)
    t = jnp.dot(t.astype(jnp.bfloat16), rxt_ref[...],
                preferred_element_type=jnp.float32)
    u = (s * jnp.tanh(t)).astype(jnp.bfloat16)
    v = jnp.dot(bh_ref[...], u, preferred_element_type=jnp.float32)
    v = jnp.dot(v.astype(jnp.bfloat16), bwt_ref[...],
                preferred_element_type=jnp.float32)
    o_ref[0] = v * inv_blur_sq + id_ref[0]


def _grid_sample_kernel(xr_ref, yr_ref, img_ref, o_ref, *, C, H, W):
    """Bilinear grid_sample, padding_mode='border', align_corners=False, for one
    (batch, hw-tile).  The data-dependent gather is one-hot bilinear-weight
    matrices contracted on the MXU; everything is built only for the current hw
    tile, so VMEM footprint is O((C*H + H + W) * thw).  Coordinate / weight math
    is kept in exact f32 (border handling relies on it).
    NOTE: the matmul gather runs along W and the reduce along H; for strongly
    non-square images, flip the orientation so the matmul takes the larger axis."""
    xg = xr_ref[0]                      # (1, thw) normalized x coords
    yg = yr_ref[0]                      # (1, thw) normalized y coords
    ix = jnp.clip(((xg + 1.0) * W - 1.0) * 0.5, 0.0, float(W - 1))
    iy = jnp.clip(((yg + 1.0) * H - 1.0) * 0.5, 0.0, float(H - 1))
    x0 = jnp.floor(ix)
    y0 = jnp.floor(iy)
    wx1 = ix - x0
    wx0 = 1.0 - wx1
    wy1 = iy - y0
    wy0 = 1.0 - wy1
    x0i = x0.astype(jnp.int32)
    y0i = y0.astype(jnp.int32)
    thw = xg.shape[-1]
    qi = jax.lax.broadcasted_iota(jnp.int32, (W, thw), 0)
    pi = jax.lax.broadcasted_iota(jnp.int32, (H, thw), 0)
    bt = jnp.where(qi == x0i, wx0, 0.0) + jnp.where(qi == x0i + 1, wx1, 0.0)  # (W, thw)
    at = jnp.where(pi == y0i, wy0, 0.0) + jnp.where(pi == y0i + 1, wy1, 0.0)  # (H, thw)
    t = jnp.dot(img_ref[0], bt, preferred_element_type=jnp.float32)           # (C*H, thw)
    t3 = t.reshape(C, H, thw)
    o_ref[0] = jnp.sum(t3 * at[None, :, :], axis=1)                           # (C, thw)


# ============================ wrappers (glue) ===============================

def _im2col_T(x_nchw, K):
    """(N, Cin, H, W) -> (N, K*K*Cin, H*W) patches (tap-major, cin-minor),
    spatial flattened on the last axis.  Plain-JAX layout plumbing."""
    N, Cin, H, W = x_nchw.shape
    ps = (K - 1) // 2
    xp = jnp.pad(x_nchw, ((0, 0), (0, 0), (ps, ps), (ps, ps)))
    taps = [xp[:, :, dy:dy + H, dx:dx + W] for dy in range(K) for dx in range(K)]
    pat = jnp.concatenate(taps, axis=1)                   # (N, K*K*Cin, H, W)
    return pat.reshape(N, K * K * Cin, H * W)


def conv_relu_ws(x_nchw, w2, b, K):
    """'same' KxK conv (stride 1) + bias + ReLU, weight-stationary im2col matmul,
    grid tiled over (batch, hw)."""
    N, Cin, H, W = x_nchw.shape
    hw = H * W
    Cout, KKC = w2.shape
    patT = _im2col_T(x_nchw, K).astype(jnp.bfloat16)
    thw = _hw_tile(hw)
    out = pl.pallas_call(
        _conv_ws_kernel,
        out_shape=jax.ShapeDtypeStruct((N, Cout, hw), jnp.float32),
        grid=(N, hw // thw),
        in_specs=[
            pl.BlockSpec((1, KKC, thw), lambda n, t: (n, 0, t)),   # patches
            pl.BlockSpec((Cout, KKC), lambda n, t: (0, 0)),        # weights (resident)
            pl.BlockSpec((Cout, 1), lambda n, t: (0, 0)),          # bias
        ],
        out_specs=pl.BlockSpec((1, Cout, thw), lambda n, t: (n, 0, t)),
        compiler_params=_PARAMS(("parallel", "parallel")),
    )(patT, w2.astype(jnp.bfloat16), b.reshape(Cout, 1))
    return out.reshape(N, Cout, H, W)


def avgpool2_ceil(x_nchw, pool=2):
    """AvgPool2d(pool, stride=pool, ceil_mode=True) as a lane-dense elementwise
    window-sum kernel (edge windows divided by their valid element count, which
    with padding=0 matches PyTorch's divisor)."""
    N, C, H, W = x_nchw.shape
    Ho, Wo = -(-H // pool), -(-W // pool)
    He, We = Ho * pool, Wo * pool
    xp = jnp.pad(x_nchw, ((0, 0), (0, 0), (0, He - H), (0, We - W)))
    L = C * Ho * Wo
    corners = [xp[:, :, i::pool, j::pool].reshape(N, 1, L)
               for i in range(pool) for j in range(pool)]
    cnt_h = np.minimum(np.arange(Ho) * pool + pool, H) - np.arange(Ho) * pool
    cnt_w = np.minimum(np.arange(Wo) * pool + pool, W) - np.arange(Wo) * pool
    inv = (1.0 / (cnt_h[:, None] * cnt_w[None, :])).astype(np.float32)   # (Ho, Wo)
    inv = np.broadcast_to(inv[None], (C, Ho, Wo)).reshape(1, 1, L)
    out = pl.pallas_call(
        _pool_avg_kernel,
        out_shape=jax.ShapeDtypeStruct((N, 1, L), jnp.float32),
        grid=(N,),
        in_specs=[pl.BlockSpec((1, 1, L), lambda n: (n, 0, 0))] * (pool * pool)
                + [pl.BlockSpec((1, 1, L), lambda n: (0, 0, 0))],
        out_specs=pl.BlockSpec((1, 1, L), lambda n: (n, 0, 0)),
        compiler_params=_PARAMS(("parallel",)),
    )(*corners, jnp.asarray(inv))
    return out.reshape(N, C, Ho, Wo)


def pred_fused(featT, w1f, s_bias, w2, b2):
    """Fused pred1+ReLU+pred2 over the interior pixels (spatial on lanes)."""
    N, Cf, M = featT.shape
    S = w1f.shape[0]
    return pl.pallas_call(
        _pred_fused_kernel,
        out_shape=jax.ShapeDtypeStruct((N, 2, M), jnp.float32),
        grid=(N,),
        in_specs=[
            pl.BlockSpec((1, Cf, M), lambda n: (n, 0, 0)),
            pl.BlockSpec((S, Cf), lambda n: (0, 0)),
            pl.BlockSpec((1, S, 1), lambda n: (n, 0, 0)),
            pl.BlockSpec((2, S), lambda n: (0, 0)),
            pl.BlockSpec((2, 1), lambda n: (0, 0)),
        ],
        out_specs=pl.BlockSpec((1, 2, M), lambda n: (n, 0, 0)),
        compiler_params=_PARAMS(("parallel",)),
    )(featT.astype(jnp.bfloat16), w1f.astype(jnp.bfloat16),
      s_bias.reshape(N, S, 1), w2.astype(jnp.bfloat16), b2.reshape(2, 1))


def deform_field(pred_bc, scale, ry, rxt, bh, bwt, ident, inv_blur_sq):
    B, Hs, Ws = pred_bc.shape
    Hh, Ww = ident.shape[1:]
    kern = functools.partial(_deform_field_kernel, inv_blur_sq=inv_blur_sq)
    return pl.pallas_call(
        kern,
        out_shape=jax.ShapeDtypeStruct((B, Hh, Ww), jnp.float32),
        grid=(B,),
        in_specs=[
            pl.BlockSpec(memory_space=pltpu.MemorySpace.SMEM),       # scale (B,)
            pl.BlockSpec((1, Hs, Ws), lambda b: (b, 0, 0)),          # pred field
            pl.BlockSpec((Hh, Hs), lambda b: (0, 0)),                # row resize (bf16)
            pl.BlockSpec((Ws, Ww), lambda b: (0, 0)),                # col resize^T (bf16)
            pl.BlockSpec((Hh, Hh), lambda b: (0, 0)),                # blur band rows (bf16)
            pl.BlockSpec((Ww, Ww), lambda b: (0, 0)),                # blur band cols^T (bf16)
            pl.BlockSpec((1, Hh, Ww), lambda b: (b, 0, 0)),          # identity grid
        ],
        out_specs=pl.BlockSpec((1, Hh, Ww), lambda b: (b, 0, 0)),
        compiler_params=_PARAMS(("parallel",)),
    )(scale, pred_bc, ry, rxt, bh, bwt, ident)


def grid_sample_border(img_nchw, x_map, y_map):
    """Bilinear grid_sample with border padding; grid tiled over (batch, hw)."""
    N, C, H, W = img_nchw.shape
    hw = H * W
    thw = _hw_tile(hw, cap=512)
    img2d = img_nchw.reshape(N, C * H, W)
    xr = x_map.reshape(N, 1, hw)
    yr = y_map.reshape(N, 1, hw)
    kern = functools.partial(_grid_sample_kernel, C=C, H=H, W=W)
    out = pl.pallas_call(
        kern,
        out_shape=jax.ShapeDtypeStruct((N, C, hw), jnp.float32),
        grid=(N, hw // thw),
        in_specs=[
            pl.BlockSpec((1, 1, thw), lambda n, t: (n, 0, t)),
            pl.BlockSpec((1, 1, thw), lambda n, t: (n, 0, t)),
            pl.BlockSpec((1, C * H, W), lambda n, t: (n, 0, 0)),
        ],
        out_specs=pl.BlockSpec((1, C, thw), lambda n, t: (n, 0, t)),
        compiler_params=_PARAMS(("parallel", "parallel")),
    )(xr, yr, img2d)
    return out.reshape(N, C, H, W)


# ===================== constant matrices / parameters =======================

def _upsample_bilinear_matrix(out_size, in_size):
    """Row-interpolation matrix matching F.interpolate(mode='bilinear',
    align_corners=False)."""
    if out_size == in_size:
        return np.eye(out_size, dtype=np.float32)
    scale = in_size / out_size
    M = np.zeros((out_size, in_size), np.float32)
    for i in range(out_size):
        src = max((i + 0.5) * scale - 0.5, 0.0)
        i0 = min(int(np.floor(src)), in_size - 1)
        i1 = i0 + 1 if i0 < in_size - 1 else i0
        l1 = src - i0
        M[i, i0] += 1.0 - l1
        M[i, i1] += l1
    return M


def _box_blur_matrix(size, pad):
    idx = np.arange(size)
    return (np.abs(idx[:, None] - idx[None, :]) <= pad).astype(np.float32)


def init_params(key, cfg):
    p = {}
    K = cfg["kernel"]
    ch = cfg["channels"]
    S = cfg["style_dim"]
    keys = jax.random.split(key, 2 * cfg["n_layers"] + 4)
    ki = 0
    cin = cfg["ic"]
    for idx in range(cfg["n_layers"]):
        fan_in, fan_out = cin * K * K, ch * K * K
        bound = 1.414 * math.sqrt(6.0 / (fan_in + fan_out))      # xavier_uniform, gain=1.414
        # weight stored flat as (Cout, K*K*Cin), tap-major / cin-minor (matches _im2col_T)
        p[f"conv{idx}_w"] = jax.random.uniform(keys[ki], (ch, K * K * cin),
                                               jnp.float32, -bound, bound); ki += 1
        bb = 1.0 / math.sqrt(fan_in)
        p[f"conv{idx}_b"] = jax.random.uniform(keys[ki], (ch,), jnp.float32, -bb, bb); ki += 1
        cin = ch
    c1_in = cin + S
    b1 = math.sqrt(6.0 / (c1_in + S))
    w1 = jax.random.uniform(keys[ki], (S, c1_in), jnp.float32, -b1, b1); ki += 1
    p["pred1_wf"] = w1[:, :cin]          # feature part of the 1x1 conv
    p["pred1_ws"] = w1[:, cin:]          # style part of the 1x1 conv
    p["pred1_b"] = jax.random.uniform(keys[ki], (S,), jnp.float32,
                                      -1.0 / math.sqrt(c1_in), 1.0 / math.sqrt(c1_in)); ki += 1
    b2 = math.sqrt(6.0 / (S + 2))
    # the module divides the last conv's weight and bias by 2
    p["pred2_w"] = jax.random.uniform(keys[ki], (2, S), jnp.float32, -b2, b2) * 0.5; ki += 1
    p["pred2_b"] = jax.random.uniform(keys[ki], (2,), jnp.float32,
                                      -1.0 / math.sqrt(S), 1.0 / math.sqrt(S)) * 0.5; ki += 1
    return p


# ================================ forward ===================================

def elastic_deform_with_style(params, x_nchw, style, cfg=CFG):
    N, C_in, H, W = x_nchw.shape
    S = cfg["style_dim"]
    K = cfg["kernel"]
    blur = cfg["blur"]
    blur_pad = (blur - 1) // 2

    x = x_nchw.astype(jnp.float32)

    # --- feature extractor: conv5x5+ReLU (+ AvgPool after the first block) ---
    feat = x
    for idx in range(cfg["n_layers"]):
        feat = conv_relu_ws(feat, params[f"conv{idx}_w"], params[f"conv{idx}_b"], K)
        if cfg["downsample"] > 1 and idx < cfg["n_layers"] - 2:
            feat = avgpool2_ceil(feat, cfg["downsample"])
    _, Cf, H2, W2 = feat.shape
    M = H2 * W2

    # --- pred_layer: fused 1x1 convs (padding=1 handled analytically below) ---
    featT = feat.reshape(N, Cf, M)                                    # spatial on lanes
    s_bias = style.astype(jnp.float32) @ params["pred1_ws"].T + params["pred1_b"]   # (N, S)
    pred_int = pred_fused(featT, params["pred1_wf"], s_bias,
                          params["pred2_w"], params["pred2_b"])       # (N, 2, M)
    pred_int = pred_int.reshape(N, 2, H2, W2)

    # The two spatial paddings of the 1x1 convs produce constant rings:
    #   outermost ring  = pred2_b
    #   second ring     = pred2_w @ relu(pred1_b) + pred2_b
    Hs, Ws = H2 + 4, W2 + 4
    ring1_val = params["pred2_w"] @ jnp.maximum(params["pred1_b"], 0.0) + params["pred2_b"]
    ii = np.arange(Hs)
    jj = np.arange(Ws)
    d = np.minimum(np.minimum(ii[:, None], Hs - 1 - ii[:, None]),
                   np.minimum(jj[None, :], Ws - 1 - jj[None, :]))
    outer_m = jnp.asarray((d == 0).astype(np.float32))
    ring_m = jnp.asarray((d == 1).astype(np.float32))
    ring_map = (outer_m[None] * params["pred2_b"][:, None, None]
                + ring_m[None] * ring1_val[:, None, None])            # (2, Hs, Ws)
    pred_padded = ring_map[None] + jnp.pad(pred_int, ((0, 0), (0, 0), (2, 2), (2, 2)))

    # --- deformation fields (B = 2N: first N = y-field, last N = x-field) ---
    pred_bc = jnp.transpose(pred_padded, (1, 0, 2, 3)).reshape(2 * N, Hs, Ws)
    ry = jnp.asarray(_upsample_bilinear_matrix(H, Hs)).astype(jnp.bfloat16)
    rxt = jnp.asarray(_upsample_bilinear_matrix(W, Ws).T).astype(jnp.bfloat16)
    bh = jnp.asarray(_box_blur_matrix(H, blur_pad)).astype(jnp.bfloat16)
    bwt = jnp.asarray(_box_blur_matrix(W, blur_pad).T).astype(jnp.bfloat16)
    scale = jnp.concatenate([jnp.full((N,), float(cfg["max_dy"]) / H, jnp.float32),
                             jnp.full((N,), float(cfg["max_dx"]) / W, jnp.float32)])
    lin_h = np.linspace(-1.0, 1.0, H, dtype=np.float32)
    lin_w = np.linspace(-1.0, 1.0, W, dtype=np.float32)
    y_id = np.repeat(lin_h[:, None], W, axis=1)
    x_id = np.repeat(lin_w[None, :], H, axis=0)
    ident = jnp.asarray(np.concatenate([np.broadcast_to(y_id, (N, H, W)),
                                        np.broadcast_to(x_id, (N, H, W))], axis=0))
    field = deform_field(pred_bc, scale, ry, rxt, bh, bwt, ident, 1.0 / (blur * blur))
    y_map = field[:N]
    x_map = field[N:]

    # --- bilinear resample of the ORIGINAL input with border padding ---
    # TODO(synk): optionally fuse the field kernel into the grid-sample kernel
    # (per-batch) once the hw-tiling is restructured to re-use the full field.
    resampled = grid_sample_border(x, x_map, y_map)
    return resampled, style


# ================================== main ====================================

if __name__ == "__main__":
    key = jax.random.PRNGKey(0)
    kx, ks = jax.random.split(key)
    N, C_IN, H, W = 2, CFG["ic"], 32, 32
    x = jax.random.normal(kx, (N, C_IN, H, W), jnp.float32)
    style = jax.random.normal(ks, (N, CFG["style_dim"]), jnp.float32)

    params = init_params(jax.random.PRNGKey(1), CFG)

    fwd = jax.jit(functools.partial(elastic_deform_with_style, cfg=CFG))
    resampled, style_out = fwd(params, x, style)
    jax.block_until_ready(resampled)

    assert resampled.shape == (N, C_IN, H, W), resampled.shape
    assert style_out.shape == (N, CFG["style_dim"])
    assert bool(jnp.all(jnp.isfinite(resampled)))
    print("KERNEL_OK")
</pallas_src>

<mosaic_0001>
module attributes {stable_mosaic.version = 11 : i64} {
  func.func @_conv_ws_kernel(%arg0: i32, %arg1: i32, %arg2: memref<1x75x512xbf16, #tpu.memory_space<vmem>>, %arg3: memref<8x75xbf16, #tpu.memory_space<vmem>>, %arg4: memref<8x1xf32, #tpu.memory_space<vmem>>, %arg5: memref<1x8x512xf32, #tpu.memory_space<vmem>>) attributes {dimension_semantics = [#tpu.dimension_semantics<parallel>, #tpu.dimension_semantics<parallel>], iteration_bounds = array<i64: 2, 2>, scalar_prefetch = 0 : i64, scratch_operands = 0 : i64, tpu.core_type = #tpu.core_type<tc>, window_params = [{transform_indices = @transform_0, window_bounds = array<i64: 1, 75, 512>}, {pipeline_mode = #tpu.pipeline_mode<synchronous>, transform_indices = @transform_1, window_bounds = array<i64: 8, 75>}, {pipeline_mode = #tpu.pipeline_mode<synchronous>, transform_indices = @transform_2, window_bounds = array<i64: 8, 1>}, {transform_indices = @transform_3, window_bounds = array<i64: 1, 8, 512>}]} {
    %c0 = arith.constant 0 : index
    %c0_0 = arith.constant 0 : index
    %0 = vector.load %arg3[%c0, %c0_0] : memref<8x75xbf16, #tpu.memory_space<vmem>>, vector<8x75xbf16>
    %c0_1 = arith.constant 0 : index
    %c0_2 = arith.constant 0 : index
    %c0_3 = arith.constant 0 : index
    %1 = vector.load %arg2[%c0_1, %c0_2, %c0_3] : memref<1x75x512xbf16, #tpu.memory_space<vmem>>, vector<1x75x512xbf16>
    %2 = vector.shape_cast %1 : vector<1x75x512xbf16> to vector<75x512xbf16>
    %cst = arith.constant dense<0.000000e+00> : vector<8x512xf32>
    %3 = tpu.matmul %0, %2, %cst {dimension_numbers = #tpu.dot_dimension_numbers<[1], [0], [0], [1], [0, 0, 1, 1], [], []>} : vector<8x75xbf16>, vector<75x512xbf16>, vector<8x512xf32> -> vector<8x512xf32>
    %c0_4 = arith.constant 0 : index
    %c0_5 = arith.constant 0 : index
    %4 = vector.load %arg4[%c0_4, %c0_5] : memref<8x1xf32, #tpu.memory_space<vmem>>, vector<8x1xf32>
    %5 = vector.broadcast %4 : vector<8x1xf32> to vector<8x512xf32>
    %6 = arith.addf %3, %5 : vector<8x512xf32>
    %cst_6 = arith.constant 0.000000e+00 : f32
    %7 = vector.broadcast %cst_6 : f32 to vector<8x512xf32>
    %8 = arith.maximumf %6, %7 : vector<8x512xf32>
    %c0_7 = arith.constant 0 : index
    %c0_8 = arith.constant 0 : index
    %c0_9 = arith.constant 0 : index
    %9 = vector.load %arg5[%c0_7, %c0_8, %c0_9] : memref<1x8x512xf32, #tpu.memory_space<vmem>>, vector<1x8x512xf32>
    %10 = vector.shape_cast %9 : vector<1x8x512xf32> to vector<8x512xf32>
    %11 = vector.shape_cast %8 : vector<8x512xf32> to vector<1x8x512xf32>
    tpu.vector_store %arg5[%c0_7, %c0_8, %c0_9], %11 {strides = array<i32>} : memref<1x8x512xf32, #tpu.memory_space<vmem>>, vector<1x8x512xf32>,
    return
  }
  func.func @transform_0(%arg0: i32, %arg1: i32) -> (i32, i32, i32) {
    %c0_i32 = arith.constant 0 : i32
    %c0_i32_0 = arith.constant 0 : i32
    return %arg0, %c0_i32, %arg1 : i32, i32, i32
  }
  func.func @transform_1(%arg0: i32, %arg1: i32) -> (i32, i32) {
    %c0_i32 = arith.constant 0 : i32
    %c0_i32_0 = arith.constant 0 : i32
    %c0_i32_1 = arith.constant 0 : i32
    return %c0_i32, %c0_i32_0 : i32, i32
  }
  func.func @transform_2(%arg0: i32, %arg1: i32) -> (i32, i32) {
    %c0_i32 = arith.constant 0 : i32
    %c0_i32_0 = arith.constant 0 : i32
    %c0_i32_1 = arith.constant 0 : i32
    return %c0_i32, %c0_i32_0 : i32, i32
  }
  func.func @transform_3(%arg0: i32, %arg1: i32) -> (i32, i32, i32) {
    %c0_i32 = arith.constant 0 : i32
    %c0_i32_0 = arith.constant 0 : i32
    return %arg0, %c0_i32, %arg1 : i32, i32, i32
  }
}

module attributes {stable_mosaic.version = 11 : i64} {
  func.func @_pool_avg_kernel(%arg0: i32, %arg1: memref<1x1x2048xf32, #tpu.memory_space<vmem>>, %arg2: memref<1x1x2048xf32, #tpu.memory_space<vmem>>, %arg3: memref<1x1x2048xf32, #tpu.memory_space<vmem>>, %arg4: memref<1x1x2048xf32, #tpu.memory_space<vmem>>, %arg5: memref<1x1x2048xf32, #tpu.memory_space<vmem>>, %arg6: memref<1x1x2048xf32, #tpu.memory_space<vmem>>) attributes {dimension_semantics = [#tpu.dimension_semantics<parallel>], iteration_bounds = array<i64: 2>, scalar_prefetch = 0 : i64, scratch_operands = 0 : i64, tpu.core_type = #tpu.core_type<tc>, window_params = [{transform_indices = @transform_0, window_bounds = array<i64: 1, 1, 2048>}, {transform_indices = @transform_1, window_bounds = array<i64: 1, 1, 2048>}, {transform_indices = @transform_2, window_bounds = array<i64: 1, 1, 2048>}, {transform_indices = @transform_3, window_bounds = array<i64: 1, 1, 2048>}, {pipeline_mode = #tpu.pipeline_mode<synchronous>, transform_indices = @transform_4, window_bounds = array<i64: 1, 1, 2048>}, {transform_indices = @transform_5, window_bounds = array<i64: 1, 1, 2048>}]} {
    %c0 = arith.constant 0 : index
    %c0_0 = arith.constant 0 : index
    %c0_1 = arith.constant 0 : index
    %0 = vector.load %arg1[%c0, %c0_0, %c0_1] : memref<1x1x2048xf32, #tpu.memory_space<vmem>>, vector<1x1x2048xf32>
    %1 = vector.shape_cast %0 : vector<1x1x2048xf32> to vector<1x2048xf32>
    %c0_2 = arith.constant 0 : index
    %c0_3 = arith.constant 0 : index
    %c0_4 = arith.constant 0 : index
    %2 = vector.load %arg2[%c0_2, %c0_3, %c0_4] : memref<1x1x2048xf32, #tpu.memory_space<vmem>>, vector<1x1x2048xf32>
    %3 = vector.shape_cast %2 : vector<1x1x2048xf32> to vector<1x2048xf32>
    %4 = arith.addf %1, %3 : vector<1x2048xf32>
    %c0_5 = arith.constant 0 : index
    %c0_6 = arith.constant 0 : index
    %c0_7 = arith.constant 0 : index
    %5 = vector.load %arg3[%c0_5, %c0_6, %c0_7] : memref<1x1x2048xf32, #tpu.memory_space<vmem>>, vector<1x1x2048xf32>
    %6 = vector.shape_cast %5 : vector<1x1x2048xf32> to vector<1x2048xf32>
    %7 = arith.addf %4, %6 : vector<1x2048xf32>
    %c0_8 = arith.constant 0 : index
    %c0_9 = arith.constant 0 : index
    %c0_10 = arith.constant 0 : index
    %8 = vector.load %arg4[%c0_8, %c0_9, %c0_10] : memref<1x1x2048xf32, #tpu.memory_space<vmem>>, vector<1x1x2048xf32>
    %9 = vector.shape_cast %8 : vector<1x1x2048xf32> to vector<1x2048xf32>
    %10 = arith.addf %7, %9 : vector<1x2048xf32>
    %c0_11 = arith.constant 0 : index
    %c0_12 = arith.constant 0 : index
    %c0_13 = arith.constant 0 : index
    %11 = vector.load %arg5[%c0_11, %c0_12, %c0_13] : memref<1x1x2048xf32, #tpu.memory_space<vmem>>, vector<1x1x2048xf32>
    %12 = vector.shape_cast %11 : vector<1x1x2048xf32> to vector<1x2048xf32>
    %13 = arith.mulf %10, %12 : vector<1x2048xf32>
    %c0_14 = arith.constant 0 : index
    %c0_15 = arith.constant 0 : index
    %c0_16 = arith.constant 0 : index
    %14 = vector.load %arg6[%c0_14, %c0_15, %c0_16] : memref<1x1x2048xf32, #tpu.memory_space<vmem>>, vector<1x1x2048xf32>
    %15 = vector.shape_cast %14 : vector<1x1x2048xf32> to vector<1x2048xf32>
    %16 = vector.shape_cast %13 : vector<1x2048xf32> to vector<1x1x2048xf32>
    tpu.vector_store %arg6[%c0_14, %c0_15, %c0_16], %16 {strides = array<i32>} : memref<1x1x2048xf32, #tpu.memory_space<vmem>>, vector<1x1x2048xf32>,
    return
  }
  func.func @transform_0(%arg0: i32) -> (i32, i32, i32) {
    %c0_i32 = arith.constant 0 : i32
    %c0_i32_0 = arith.constant 0 : i32
    %c0_i32_1 = arith.constant 0 : i32
    return %arg0, %c0_i32, %c0_i32_0 : i32, i32, i32
  }
  func.func @transform_1(%arg0: i32) -> (i32, i32, i32) {
    %c0_i32 = arith.constant 0 : i32
    %c0_i32_0 = arith.constant 0 : i32
    %c0_i32_1 = arith.constant 0 : i32
    return %arg0, %c0_i32, %c0_i32_0 : i32, i32, i32
  }
  func.func @transform_2(%arg0: i32) -> (i32, i32, i32) {
    %c0_i32 = arith.constant 0 : i32
    %c0_i32_0 = arith.constant 0 : i32
    %c0_i32_1 = arith.constant 0 : i32
    return %arg0, %c0_i32, %c0_i32_0 : i32, i32, i32
  }
  func.func @transform_3(%arg0: i32) -> (i32, i32, i32) {
    %c0_i32 = arith.constant 0 : i32
    %c0_i32_0 = arith.constant 0 : i32
    %c0_i32_1 = arith.constant 0 : i32
    return %arg0, %c0_i32, %c0_i32_0 : i32, i32, i32
  }
  func.func @transform_4(%arg0: i32) -> (i32, i32, i32) {
    %c0_i32 = arith.constant 0 : i32
    %c0_i32_0 = arith.constant 0 : i32
    %c0_i32_1 = arith.constant 0 : i32
    %c0_i32_2 = arith.constant 0 : i32
    return %c0_i32, %c0_i32_0, %c0_i32_1 : i32, i32, i32
  }
  func.func @transform_5(%arg0: i32) -> (i32, i32, i32) {
    %c0_i32 = arith.constant 0 : i32
    %c0_i32_0 = arith.constant 0 : i32
    %c0_i32_1 = arith.constant 0 : i32
    return %arg0, %c0_i32, %c0_i32_0 : i32, i32, i32
  }
}

module attributes {stable_mosaic.version = 11 : i64} {
  func.func @_conv_ws_kernel(%arg0: i32, %arg1: i32, %arg2: memref<1x200x256xbf16, #tpu.memory_space<vmem>>, %arg3: memref<8x200xbf16, #tpu.memory_space<vmem>>, %arg4: memref<8x1xf32, #tpu.memory_space<vmem>>, %arg5: memref<1x8x256xf32, #tpu.memory_space<vmem>>) attributes {dimension_semantics = [#tpu.dimension_semantics<parallel>, #tpu.dimension_semantics<parallel>], iteration_bounds = array<i64: 2, 1>, scalar_prefetch = 0 : i64, scratch_operands = 0 : i64, tpu.core_type = #tpu.core_type<tc>, window_params = [{transform_indices = @transform_0, window_bounds = array<i64: 1, 200, 256>}, {pipeline_mode = #tpu.pipeline_mode<synchronous>, transform_indices = @transform_1, window_bounds = array<i64: 8, 200>}, {pipeline_mode = #tpu.pipeline_mode<synchronous>, transform_indices = @transform_2, window_bounds = array<i64: 8, 1>}, {transform_indices = @transform_3, window_bounds = array<i64: 1, 8, 256>}]} {
    %c0 = arith.constant 0 : index
    %c0_0 = arith.constant 0 : index
    %0 = vector.load %arg3[%c0, %c0_0] : memref<8x200xbf16, #tpu.memory_space<vmem>>, vector<8x200xbf16>
    %c0_1 = arith.constant 0 : index
    %c0_2 = arith.constant 0 : index
    %c0_3 = arith.constant 0 : index
    %1 = vector.load %arg2[%c0_1, %c0_2, %c0_3] : memref<1x200x256xbf16, #tpu.memory_space<vmem>>, vector<1x200x256xbf16>
    %2 = vector.shape_cast %1 : vector<1x200x256xbf16> to vector<200x256xbf16>
    %cst = arith.constant dense<0.000000e+00> : vector<8x256xf32>
    %3 = tpu.matmul %0, %2, %cst {dimension_numbers = #tpu.dot_dimension_numbers<[1], [0], [0], [1], [0, 0, 1, 1], [], []>} : vector<8x200xbf16>, vector<200x256xbf16>, vector<8x256xf32> -> vector<8x256xf32>
    %c0_4 = arith.constant 0 : index
    %c0_5 = arith.constant 0 : index
    %4 = vector.load %arg4[%c0_4, %c0_5] : memref<8x1xf32, #tpu.memory_space<vmem>>, vector<8x1xf32>
    %5 = vector.broadcast %4 : vector<8x1xf32> to vector<8x256xf32>
    %6 = arith.addf %3, %5 : vector<8x256xf32>
    %cst_6 = arith.constant 0.000000e+00 : f32
    %7 = vector.broadcast %cst_6 : f32 to vector<8x256xf32>
    %8 = arith.maximumf %6, %7 : vector<8x256xf32>
    %c0_7 = arith.constant 0 : index
    %c0_8 = arith.constant 0 : index
    %c0_9 = arith.constant 0 : index
    %9 = vector.load %arg5[%c0_7, %c0_8, %c0_9] : memref<1x8x256xf32, #tpu.memory_space<vmem>>, vector<1x8x256xf32>
    %10 = vector.shape_cast %9 : vector<1x8x256xf32> to vector<8x256xf32>
    %11 = vector.shape_cast %8 : vector<8x256xf32> to vector<1x8x256xf32>
    tpu.vector_store %arg5[%c0_7, %c0_8, %c0_9], %11 {strides = array<i32>} : memref<1x8x256xf32, #tpu.memory_space<vmem>>, vector<1x8x256xf32>,
    return
  }
  func.func @transform_0(%arg0: i32, %arg1: i32) -> (i32, i32, i32) {
    %c0_i32 = arith.constant 0 : i32
    %c0_i32_0 = arith.constant 0 : i32
    return %arg0, %c0_i32, %arg1 : i32, i32, i32
  }
  func.func @transform_1(%arg0: i32, %arg1: i32) -> (i32, i32) {
    %c0_i32 = arith.constant 0 : i32
    %c0_i32_0 = arith.constant 0 : i32
    %c0_i32_1 = arith.constant 0 : i32
    return %c0_i32, %c0_i32_0 : i32, i32
  }
  func.func @transform_2(%arg0: i32, %arg1: i32) -> (i32, i32) {
    %c0_i32 = arith.constant 0 : i32
    %c0_i32_0 = arith.constant 0 : i32
    %c0_i32_1 = arith.constant 0 : i32
    return %c0_i32, %c0_i32_0 : i32, i32
  }
  func.func @transform_3(%arg0: i32, %arg1: i32) -> (i32, i32, i32) {
    %c0_i32 = arith.constant 0 : i32
    %c0_i32_0 = arith.constant 0 : i32
    return %arg0, %c0_i32, %arg1 : i32, i32, i32
  }
}

module attributes {stable_mosaic.version = 11 : i64} {
  func.func @_deform_field_kernel(%arg0: i32, %arg1: memref<4xf32, #tpu.memory_space<smem>>, %arg2: memref<1x20x20xf32, #tpu.memory_space<vmem>>, %arg3: memref<32x20xbf16, #tpu.memory_space<vmem>>, %arg4: memref<20x32xbf16, #tpu.memory_space<vmem>>, %arg5: memref<32x32xbf16, #tpu.memory_space<vmem>>, %arg6: memref<32x32xbf16, #tpu.memory_space<vmem>>, %arg7: memref<1x32x32xf32, #tpu.memory_space<vmem>>, %arg8: memref<1x32x32xf32, #tpu.memory_space<vmem>>) attributes {dimension_semantics = [#tpu.dimension_semantics<parallel>], iteration_bounds = array<i64: 4>, scalar_prefetch = 0 : i64, scratch_operands = 0 : i64, tpu.core_type = #tpu.core_type<tc>, window_params = [{transform_indices = @transform_0, window_bounds = array<i64: 4>}, {transform_indices = @transform_1, window_bounds = array<i64: 1, 20, 20>}, {pipeline_mode = #tpu.pipeline_mode<synchronous>, transform_indices = @transform_2, window_bounds = array<i64: 32, 20>}, {pipeline_mode = #tpu.pipeline_mode<synchronous>, transform_indices = @transform_3, window_bounds = array<i64: 20, 32>}, {pipeline_mode = #tpu.pipeline_mode<synchronous>, transform_indices = @transform_4, window_bounds = array<i64: 32, 32>}, {pipeline_mode = #tpu.pipeline_mode<synchronous>, transform_indices = @transform_5, window_bounds = array<i64: 32, 32>}, {transform_indices = @transform_6, window_bounds = array<i64: 1, 32, 32>}, {transform_indices = @transform_7, window_bounds = array<i64: 1, 32, 32>}]} {
    %0 = arith.index_cast %arg0 : i32 to index
    %1 = memref.load %arg1[%0] : memref<4xf32, #tpu.memory_space<smem>>
    %c0 = arith.constant 0 : index
    %c0_0 = arith.constant 0 : index
    %2 = vector.load %arg3[%c0, %c0_0] : memref<32x20xbf16, #tpu.memory_space<vmem>>, vector<32x20xbf16>
    %c0_1 = arith.constant 0 : index
    %c0_2 = arith.constant 0 : index
    %c0_3 = arith.constant 0 : index
    %3 = vector.load %arg2[%c0_1, %c0_2, %c0_3] : memref<1x20x20xf32, #tpu.memory_space<vmem>>, vector<1x20x20xf32>
    %4 = vector.shape_cast %3 : vector<1x20x20xf32> to vector<20x20xf32>
    %5 = arith.truncf %4 : vector<20x20xf32> to vector<20x20xbf16>
    %cst = arith.constant dense<0.000000e+00> : vector<32x20xf32>
    %6 = tpu.matmul %2, %5, %cst {dimension_numbers = #tpu.dot_dimension_numbers<[1], [0], [0], [1], [0, 0, 1, 1], [], []>} : vector<32x20xbf16>, vector<20x20xbf16>, vector<32x20xf32> -> vector<32x20xf32>
    %7 = arith.truncf %6 : vector<32x20xf32> to vector<32x20xbf16>
    %c0_4 = arith.constant 0 : index
    %c0_5 = arith.constant 0 : index
    %8 = vector.load %arg4[%c0_4, %c0_5] : memref<20x32xbf16, #tpu.memory_space<vmem>>, vector<20x32xbf16>
    %cst_6 = arith.constant dense<0.000000e+00> : vector<32x32xf32>
    %9 = tpu.matmul %7, %8, %cst_6 {dimension_numbers = #tpu.dot_dimension_numbers<[1], [0], [0], [1], [0, 0, 1, 1], [], []>} : vector<32x20xbf16>, vector<20x32xbf16>, vector<32x32xf32> -> vector<32x32xf32>
    %10 = math.tanh %9 : vector<32x32xf32>
    %11 = vector.broadcast %1 : f32 to vector<32x32xf32>
    %12 = arith.mulf %11, %10 : vector<32x32xf32>
    %13 = arith.truncf %12 : vector<32x32xf32> to vector<32x32xbf16>
    %c0_7 = arith.constant 0 : index
    %c0_8 = arith.constant 0 : index
    %14 = vector.load %arg5[%c0_7, %c0_8] : memref<32x32xbf16, #tpu.memory_space<vmem>>, vector<32x32xbf16>
    %cst_9 = arith.constant dense<0.000000e+00> : vector<32x32xf32>
    %15 = tpu.matmul %14, %13, %cst_9 {dimension_numbers = #tpu.dot_dimension_numbers<[1], [0], [0], [1], [0, 0, 1, 1], [], []>} : vector<32x32xbf16>, vector<32x32xbf16>, vector<32x32xf32> -> vector<32x32xf32>
    %16 = arith.truncf %15 : vector<32x32xf32> to vector<32x32xbf16>
    %c0_10 = arith.constant 0 : index
    %c0_11 = arith.constant 0 : index
    %17 = vector.load %arg6[%c0_10, %c0_11] : memref<32x32xbf16, #tpu.memory_space<vmem>>, vector<32x32xbf16>
    %cst_12 = arith.constant dense<0.000000e+00> : vector<32x32xf32>
    %18 = tpu.matmul %16, %17, %cst_12 {dimension_numbers = #tpu.dot_dimension_numbers<[1], [0], [0], [1], [0, 0, 1, 1], [], []>} : vector<32x32xbf16>, vector<32x32xbf16>, vector<32x32xf32> -> vector<32x32xf32>
    %cst_13 = arith.constant 0.0123456791 : f32
    %19 = vector.broadcast %cst_13 : f32 to vector<32x32xf32>
    %20 = arith.mulf %18, %19 : vector<32x32xf32>
    %c0_14 = arith.constant 0 : index
    %c0_15 = arith.constant 0 : index
    %c0_16 = arith.constant 0 : index
    %21 = vector.load %arg7[%c0_14, %c0_15, %c0_16] : memref<1x32x32xf32, #tpu.memory_space<vmem>>, vector<1x32x32xf32>
    %22 = vector.shape_cast %21 : vector<1x32x32xf32> to vector<32x32xf32>
    %23 = arith.addf %20, %22 : vector<32x32xf32>
    %c0_17 = arith.constant 0 : index
    %c0_18 = arith.constant 0 : index
    %c0_19 = arith.constant 0 : index
    %24 = vector.load %arg8[%c0_17, %c0_18, %c0_19] : memref<1x32x32xf32, #tpu.memory_space<vmem>>, vector<1x32x32xf32>
    %25 = vector.shape_cast %24 : vector<1x32x32xf32> to vector<32x32xf32>
    %26 = vector.shape_cast %23 : vector<32x32xf32> to vector<1x32x32xf32>
    tpu.vector_store %arg8[%c0_17, %c0_18, %c0_19], %26 {strides = array<i32>} : memref<1x32x32xf32, #tpu.memory_space<vmem>>, vector<1x32x32xf32>,
    return
  }
  func.func @transform_0(%arg0: i32) -> i32 {
    %c0_i32 = arith.constant 0 : i32
    %c0_i32_0 = arith.constant 0 : i32
    return %c0_i32 : i32
  }
  func.func @transform_1(%arg0: i32) -> (i32, i32, i32) {
    %c0_i32 = arith.constant 0 : i32
    %c0_i32_0 = arith.constant 0 : i32
    %c0_i32_1 = arith.constant 0 : i32
    return %arg0, %c0_i32, %c0_i32_0 : i32, i32, i32
  }
  func.func @transform_2(%arg0: i32) -> (i32, i32) {
    %c0_i32 = arith.constant 0 : i32
    %c0_i32_0 = arith.constant 0 : i32
    %c0_i32_1 = arith.constant 0 : i32
    return %c0_i32, %c0_i32_0 : i32, i32
  }
  func.func @transform_3(%arg0: i32) -> (i32, i32) {
    %c0_i32 = arith.constant 0 : i32
    %c0_i32_0 = arith.constant 0 : i32
    %c0_i32_1 = arith.constant 0 : i32
    return %c0_i32, %c0_i32_0 : i32, i32
  }
  func.func @transform_4(%arg0: i32) -> (i32, i32) {
    %c0_i32 = arith.constant 0 : i32
    %c0_i32_0 = arith.constant 0 : i32
    %c0_i32_1 = arith.constant 0 : i32
    return %c0_i32, %c0_i32_0 : i32, i32
  }
  func.func @transform_5(%arg0: i32) -> (i32, i32) {
    %c0_i32 = arith.constant 0 : i32
    %c0_i32_0 = arith.constant 0 : i32
    %c0_i32_1 = arith.constant 0 : i32
    return %c0_i32, %c0_i32_0 : i32, i32
  }
  func.func @transform_6(%arg0: i32) -> (i32, i32, i32) {
    %c0_i32 = arith.constant 0 : i32
    %c0_i32_0 = arith.constant 0 : i32
    %c0_i32_1 = arith.constant 0 : i32
    return %arg0, %c0_i32, %c0_i32_0 : i32, i32, i32
  }
  func.func @transform_7(%arg0: i32) -> (i32, i32, i32) {
    %c0_i32 = arith.constant 0 : i32
    %c0_i32_0 = arith.constant 0 : i32
    %c0_i32_1 = arith.constant 0 : i32
    return %arg0, %c0_i32, %c0_i32_0 : i32, i32, i32
  }
}

module attributes {stable_mosaic.version = 11 : i64} {
  func.func @_pred_fused_kernel(%arg0: i32, %arg1: memref<1x8x256xbf16, #tpu.memory_space<vmem>>, %arg2: memref<32x8xbf16, #tpu.memory_space<vmem>>, %arg3: memref<1x32x1xf32, #tpu.memory_space<vmem>>, %arg4: memref<2x32xbf16, #tpu.memory_space<vmem>>, %arg5: memref<2x1xf32, #tpu.memory_space<vmem>>, %arg6: memref<1x2x256xf32, #tpu.memory_space<vmem>>) attributes {dimension_semantics = [#tpu.dimension_semantics<parallel>], iteration_bounds = array<i64: 2>, scalar_prefetch = 0 : i64, scratch_operands = 0 : i64, tpu.core_type = #tpu.core_type<tc>, window_params = [{transform_indices = @transform_0, window_bounds = array<i64: 1, 8, 256>}, {pipeline_mode = #tpu.pipeline_mode<synchronous>, transform_indices = @transform_1, window_bounds = array<i64: 32, 8>}, {transform_indices = @transform_2, window_bounds = array<i64: 1, 32, 1>}, {pipeline_mode = #tpu.pipeline_mode<synchronous>, transform_indices = @transform_3, window_bounds = array<i64: 2, 32>}, {pipeline_mode = #tpu.pipeline_mode<synchronous>, transform_indices = @transform_4, window_bounds = array<i64: 2, 1>}, {transform_indices = @transform_5, window_bounds = array<i64: 1, 2, 256>}]} {
    %c0 = arith.constant 0 : index
    %c0_0 = arith.constant 0 : index
    %0 = vector.load %arg2[%c0, %c0_0] : memref<32x8xbf16, #tpu.memory_space<vmem>>, vector<32x8xbf16>
    %c0_1 = arith.constant 0 : index
    %c0_2 = arith.constant 0 : index
    %c0_3 = arith.constant 0 : index
    %1 = vector.load %arg1[%c0_1, %c0_2, %c0_3] : memref<1x8x256xbf16, #tpu.memory_space<vmem>>, vector<1x8x256xbf16>
    %2 = vector.shape_cast %1 : vector<1x8x256xbf16> to vector<8x256xbf16>
    %cst = arith.constant dense<0.000000e+00> : vector<32x256xf32>
    %3 = tpu.matmul %0, %2, %cst {dimension_numbers = #tpu.dot_dimension_numbers<[1], [0], [0], [1], [0, 0, 1, 1], [], []>} : vector<32x8xbf16>, vector<8x256xbf16>, vector<32x256xf32> -> vector<32x256xf32>
    %c0_4 = arith.constant 0 : index
    %c0_5 = arith.constant 0 : index
    %c0_6 = arith.constant 0 : index
    %4 = vector.load %arg3[%c0_4, %c0_5, %c0_6] : memref<1x32x1xf32, #tpu.memory_space<vmem>>, vector<1x32x1xf32>
    %5 = vector.shape_cast %4 : vector<1x32x1xf32> to vector<32x1xf32>
    %6 = vector.broadcast %5 : vector<32x1xf32> to vector<32x256xf32>
    %7 = arith.addf %3, %6 : vector<32x256xf32>
    %cst_7 = arith.constant 0.000000e+00 : f32
    %8 = vector.broadcast %cst_7 : f32 to vector<32x256xf32>
    %9 = arith.maximumf %7, %8 : vector<32x256xf32>
    %10 = arith.truncf %9 : vector<32x256xf32> to vector<32x256xbf16>
    %c0_8 = arith.constant 0 : index
    %c0_9 = arith.constant 0 : index
    %11 = vector.load %arg4[%c0_8, %c0_9] : memref<2x32xbf16, #tpu.memory_space<vmem>>, vector<2x32xbf16>
    %cst_10 = arith.constant dense<0.000000e+00> : vector<2x256xf32>
    %12 = tpu.matmul %11, %10, %cst_10 {dimension_numbers = #tpu.dot_dimension_numbers<[1], [0], [0], [1], [0, 0, 1, 1], [], []>} : vector<2x32xbf16>, vector<32x256xbf16>, vector<2x256xf32> -> vector<2x256xf32>
    %c0_11 = arith.constant 0 : index
    %c0_12 = arith.constant 0 : index
    %13 = vector.load %arg5[%c0_11, %c0_12] : memref<2x1xf32, #tpu.memory_space<vmem>>, vector<2x1xf32>
    %14 = vector.broadcast %13 : vector<2x1xf32> to vector<2x256xf32>
    %15 = arith.addf %12, %14 : vector<2x256xf32>
    %c0_13 = arith.constant 0 : index
    %c0_14 = arith.constant 0 : index
    %c0_15 = arith.constant 0 : index
    %16 = vector.load %arg6[%c0_13, %c0_14, %c0_15] : memref<1x2x256xf32, #tpu.memory_space<vmem>>, vector<1x2x256xf32>
    %17 = vector.shape_cast %16 : vector<1x2x256xf32> to vector<2x256xf32>
    %18 = vector.shape_cast %15 : vector<2x256xf32> to vector<1x2x256xf32>
    tpu.vector_store %arg6[%c0_13, %c0_14, %c0_15], %18 {strides = array<i32>} : memref<1x2x256xf32, #tpu.memory_space<vmem>>, vector<1x2x256xf32>,
    return
  }
  func.func @transform_0(%arg0: i32) -> (i32, i32, i32) {
    %c0_i32 = arith.constant 0 : i32
    %c0_i32_0 = arith.constant 0 : i32
    %c0_i32_1 = arith.constant 0 : i32
    return %arg0, %c0_i32, %c0_i32_0 : i32, i32, i32
  }
  func.func @transform_1(%arg0: i32) -> (i32, i32) {
    %c0_i32 = arith.constant 0 : i32
    %c0_i32_0 = arith.constant 0 : i32
    %c0_i32_1 = arith.constant 0 : i32
    return %c0_i32, %c0_i32_0 : i32, i32
  }
  func.func @transform_2(%arg0: i32) -> (i32, i32, i32) {
    %c0_i32 = arith.constant 0 : i32
    %c0_i32_0 = arith.constant 0 : i32
    %c0_i32_1 = arith.constant 0 : i32
    return %arg0, %c0_i32, %c0_i32_0 : i32, i32, i32
  }
  func.func @transform_3(%arg0: i32) -> (i32, i32) {
    %c0_i32 = arith.constant 0 : i32
    %c0_i32_0 = arith.constant 0 : i32
    %c0_i32_1 = arith.constant 0 : i32
    return %c0_i32, %c0_i32_0 : i32, i32
  }
  func.func @transform_4(%arg0: i32) -> (i32, i32) {
    %c0_i32 = arith.constant 0 : i32
    %c0_i32_0 = arith.constant 0 : i32
    %c0_i32_1 = arith.constant 0 : i32
    return %c0_i32, %c0_i32_0 : i32, i32
  }
  func.func @transform_5(%arg0: i32) -> (i32, i32, i32) {
    %c0_i32 = arith.constant 0 : i32
    %c0_i32_0 = arith.constant 0 : i32
    %c0_i32_1 = arith.constant 0 : i32
    return %arg0, %c0_i32, %c0_i32_0 : i32, i32, i32
  }
}

module attributes {stable_mosaic.version = 11 : i64} {
  func.func @_grid_sample_kernel(%arg0: i32, %arg1: i32, %arg2: memref<1x1x512xf32, #tpu.memory_space<vmem>>, %arg3: memref<1x1x512xf32, #tpu.memory_space<vmem>>, %arg4: memref<1x96x32xf32, #tpu.memory_space<vmem>>, %arg5: memref<1x3x512xf32, #tpu.memory_space<vmem>>) attributes {dimension_semantics = [#tpu.dimension_semantics<parallel>, #tpu.dimension_semantics<parallel>], iteration_bounds = array<i64: 2, 2>, scalar_prefetch = 0 : i64, scratch_operands = 0 : i64, tpu.core_type = #tpu.core_type<tc>, window_params = [{transform_indices = @transform_0, window_bounds = array<i64: 1, 1, 512>}, {transform_indices = @transform_1, window_bounds = array<i64: 1, 1, 512>}, {transform_indices = @transform_2, window_bounds = array<i64: 1, 96, 32>}, {transform_indices = @transform_3, window_bounds = array<i64: 1, 3, 512>}]} {
    %c0 = arith.constant 0 : index
    %c0_0 = arith.constant 0 : index
    %c0_1 = arith.constant 0 : index
    %0 = vector.load %arg2[%c0, %c0_0, %c0_1] : memref<1x1x512xf32, #tpu.memory_space<vmem>>, vector<1x1x512xf32>
    %1 = vector.shape_cast %0 : vector<1x1x512xf32> to vector<1x512xf32>
    %c0_2 = arith.constant 0 : index
    %c0_3 = arith.constant 0 : index
    %c0_4 = arith.constant 0 : index
    %2 = vector.load %arg3[%c0_2, %c0_3, %c0_4] : memref<1x1x512xf32, #tpu.memory_space<vmem>>, vector<1x1x512xf32>
    %3 = vector.shape_cast %2 : vector<1x1x512xf32> to vector<1x512xf32>
    %cst = arith.constant 1.000000e+00 : f32
    %4 = vector.broadcast %cst : f32 to vector<1x512xf32>
    %5 = arith.addf %1, %4 : vector<1x512xf32>
    %cst_5 = arith.constant 3.200000e+01 : f32
    %6 = vector.broadcast %cst_5 : f32 to vector<1x512xf32>
    %7 = arith.mulf %5, %6 : vector<1x512xf32>
    %cst_6 = arith.constant 1.000000e+00 : f32
    %8 = vector.broadcast %cst_6 : f32 to vector<1x512xf32>
    %9 = arith.subf %7, %8 : vector<1x512xf32>
    %cst_7 = arith.constant 5.000000e-01 : f32
    %10 = vector.broadcast %cst_7 : f32 to vector<1x512xf32>
    %11 = arith.mulf %9, %10 : vector<1x512xf32>
    %cst_8 = arith.constant 0.000000e+00 : f32
    %cst_9 = arith.constant 3.100000e+01 : f32
    %12 = vector.broadcast %cst_8 : f32 to vector<1x512xf32>
    %13 = arith.maximumf %12, %11 : vector<1x512xf32>
    %14 = vector.broadcast %cst_9 : f32 to vector<1x512xf32>
    %15 = arith.minimumf %14, %13 : vector<1x512xf32>
    %cst_10 = arith.constant 1.000000e+00 : f32
    %16 = vector.broadcast %cst_10 : f32 to vector<1x512xf32>
    %17 = arith.addf %3, %16 : vector<1x512xf32>
    %cst_11 = arith.constant 3.200000e+01 : f32
    %18 = vector.broadcast %cst_11 : f32 to vector<1x512xf32>
    %19 = arith.mulf %17, %18 : vector<1x512xf32>
    %cst_12 = arith.constant 1.000000e+00 : f32
    %20 = vector.broadcast %cst_12 : f32 to vector<1x512xf32>
    %21 = arith.subf %19, %20 : vector<1x512xf32>
    %cst_13 = arith.constant 5.000000e-01 : f32
    %22 = vector.broadcast %cst_13 : f32 to vector<1x512xf32>
    %23 = arith.mulf %21, %22 : vector<1x512xf32>
    %cst_14 = arith.constant 0.000000e+00 : f32
    %cst_15 = arith.constant 3.100000e+01 : f32
    %24 = vector.broadcast %cst_14 : f32 to vector<1x512xf32>
    %25 = arith.maximumf %24, %23 : vector<1x512xf32>
    %26 = vector.broadcast %cst_15 : f32 to vector<1x512xf32>
    %27 = arith.minimumf %26, %25 : vector<1x512xf32>
    %28 = math.floor %15 : vector<1x512xf32>
    %29 = math.floor %27 : vector<1x512xf32>
    %30 = arith.subf %15, %28 : vector<1x512xf32>
    %cst_16 = arith.constant 1.000000e+00 : f32
    %31 = vector.broadcast %cst_16 : f32 to vector<1x512xf32>
    %32 = arith.subf %31, %30 : vector<1x512xf32>
    %33 = arith.subf %27, %29 : vector<1x512xf32>
    %cst_17 = arith.constant 1.000000e+00 : f32
    %34 = vector.broadcast %cst_17 : f32 to vector<1x512xf32>
    %35 = arith.subf %34, %33 : vector<1x512xf32>
    %36 = arith.fptosi %28 : vector<1x512xf32> to vector<1x512xi32>
    %37 = arith.fptosi %29 : vector<1x512xf32> to vector<1x512xi32>
    %38 = tpu.iota {dimensions = array<i32: 0>} : vector<32x512xi32>
    %39 = tpu.iota {dimensions = array<i32: 0>} : vector<32x512xi32>
    %40 = vector.broadcast %36 : vector<1x512xi32> to vector<32x512xi32>
    %41 = arith.cmpi eq, %38, %40 : vector<32x512xi32>
    %cst_18 = arith.constant 0.000000e+00 : f32
    %42 = vector.shape_cast %32 : vector<1x512xf32> to vector<1x512xf32>
    %43 = vector.broadcast %42 : vector<1x512xf32> to vector<32x512xf32>
    %44 = vector.broadcast %cst_18 : f32 to vector<32x512xf32>
    %45 = arith.select %41, %43, %44 : vector<32x512xi1>, vector<32x512xf32>
    %c1_i32 = arith.constant 1 : i32
    %46 = vector.broadcast %c1_i32 : i32 to vector<1x512xi32>
    %47 = arith.addi %36, %46 : vector<1x512xi32>
    %48 = vector.broadcast %47 : vector<1x512xi32> to vector<32x512xi32>
    %49 = arith.cmpi eq, %38, %48 : vector<32x512xi32>
    %cst_19 = arith.constant 0.000000e+00 : f32
    %50 = vector.shape_cast %30 : vector<1x512xf32> to vector<1x512xf32>
    %51 = vector.broadcast %50 : vector<1x512xf32> to vector<32x512xf32>
    %52 = vector.broadcast %cst_19 : f32 to vector<32x512xf32>
    %53 = arith.select %49, %51, %52 : vector<32x512xi1>, vector<32x512xf32>
    %54 = arith.addf %45, %53 : vector<32x512xf32>
    %55 = vector.broadcast %37 : vector<1x512xi32> to vector<32x512xi32>
    %56 = arith.cmpi eq, %39, %55 : vector<32x512xi32>
    %cst_20 = arith.constant 0.000000e+00 : f32
    %57 = vector.shape_cast %35 : vector<1x512xf32> to vector<1x512xf32>
    %58 = vector.broadcast %57 : vector<1x512xf32> to vector<32x512xf32>
    %59 = vector.broadcast %cst_20 : f32 to vector<32x512xf32>
    %60 = arith.select %56, %58, %59 : vector<32x512xi1>, vector<32x512xf32>
    %c1_i32_21 = arith.constant 1 : i32
    %61 = vector.broadcast %c1_i32_21 : i32 to vector<1x512xi32>
    %62 = arith.addi %37, %61 : vector<1x512xi32>
    %63 = vector.broadcast %62 : vector<1x512xi32> to vector<32x512xi32>
    %64 = arith.cmpi eq, %39, %63 : vector<32x512xi32>
    %cst_22 = arith.constant 0.000000e+00 : f32
    %65 = vector.shape_cast %33 : vector<1x512xf32> to vector<1x512xf32>
    %66 = vector.broadcast %65 : vector<1x512xf32> to vector<32x512xf32>
    %67 = vector.broadcast %cst_22 : f32 to vector<32x512xf32>
    %68 = arith.select %64, %66, %67 : vector<32x512xi1>, vector<32x512xf32>
    %69 = arith.addf %60, %68 : vector<32x512xf32>
    %c0_23 = arith.constant 0 : index
    %c0_24 = arith.constant 0 : index
    %c0_25 = arith.constant 0 : index
    %70 = vector.load %arg4[%c0_23, %c0_24, %c0_25] : memref<1x96x32xf32, #tpu.memory_space<vmem>>, vector<1x96x32xf32>
    %71 = vector.shape_cast %70 : vector<1x96x32xf32> to vector<96x32xf32>
    %cst_26 = arith.constant dense<0.000000e+00> : vector<96x512xf32>
    %72 = tpu.matmul %71, %54, %cst_26 {dimension_numbers = #tpu.dot_dimension_numbers<[1], [0], [0], [1], [0, 0, 1, 1], [], []>} : vector<96x32xf32>, vector<32x512xf32>, vector<96x512xf32> -> vector<96x512xf32>
    %73 = vector.shape_cast %72 : vector<96x512xf32> to vector<3x32x512xf32>
    %74 = vector.shape_cast %69 : vector<32x512xf32> to vector<1x32x512xf32>
    %75 = vector.broadcast %74 : vector<1x32x512xf32> to vector<3x32x512xf32>
    %76 = arith.mulf %73, %75 : vector<3x32x512xf32>
    %cst_27 = arith.constant dense<0.000000e+00> : vector<3x512xf32>
    %77 = vector.multi_reduction <add>, %76, %cst_27 [1] : vector<3x32x512xf32> to vector<3x512xf32>
    %c0_28 = arith.constant 0 : index
    %c0_29 = arith.constant 0 : index
    %c0_30 = arith.constant 0 : index
    %78 = vector.load %arg5[%c0_28, %c0_29, %c0_30] : memref<1x3x512xf32, #tpu.memory_space<vmem>>, vector<1x3x512xf32>
    %79 = vector.shape_cast %78 : vector<1x3x512xf32> to vector<3x512xf32>
    %80 = vector.shape_cast %77 : vector<3x512xf32> to vector<1x3x512xf32>
    tpu.vector_store %arg5[%c0_28, %c0_29, %c0_30], %80 {strides = array<i32>} : memref<1x3x512xf32, #tpu.memory_space<vmem>>, vector<1x3x512xf32>,
    return
  }
  func.func @transform_0(%arg0: i32, %arg1: i32) -> (i32, i32, i32) {
    %c0_i32 = arith.constant 0 : i32
    %c0_i32_0 = arith.constant 0 : i32
    return %arg0, %c0_i32, %arg1 : i32, i32, i32
  }
  func.func @transform_1(%arg0: i32, %arg1: i32) -> (i32, i32, i32) {
    %c0_i32 = arith.constant 0 : i32
    %c0_i32_0 = arith.constant 0 : i32
    return %arg0, %c0_i32, %arg1 : i32, i32, i32
  }
  func.func @transform_2(%arg0: i32, %arg1: i32) -> (i32, i32, i32) {
    %c0_i32 = arith.constant 0 : i32
    %c0_i32_0 = arith.constant 0 : i32
    %c0_i32_1 = arith.constant 0 : i32
    return %arg0, %c0_i32, %c0_i32_0 : i32, i32, i32
  }
  func.func @transform_3(%arg0: i32, %arg1: i32) -> (i32, i32, i32) {
    %c0_i32 = arith.constant 0 : i32
    %c0_i32_0 = arith.constant 0 : i32
    return %arg0, %c0_i32, %arg1 : i32, i32, i32
  }
}

</mosaic_0001>

<bundles_post_ra>
// kernel: elastic_deform_with_style.7
= control target key start
LH: loop header
LB: loop body
LE: loop exit
PB: predicated region body
PF: predicated region fallthrough
CT: control target
= control target key end

     0   :  { %s810_s12 = smov 0   ;;  %s812_s13 = smov 0   ;;  %s992_s0 = inlined_call_operand.vmem [shape: bf16[2,75,1024], index: 0, kind: input, shape index: {}]   ;;  %s993_s1 = inlined_call_operand.vmem [shape: bf16[8,75], index: 1, kind: input, shape index: {}]   ;;  %s994_s2 = inlined_call_operand.vmem [shape: f32[8,1], index: 2, kind: input, shape index: {}]   ;;  %s995_s3 = inlined_call_operand.vmem [shape: f32[2,8,1024], index: 3, kind: output, shape index: {}]  }
   0x1   :  { %s814_s14 = smov 0   ;;  %s816_s15 = smov 0  }
   0x2   :  { %s818_s16 = smov 0   ;;  %s820_s17 = smov 0  }
   0x3   :  { %s822_s18 = smov 0  }
   0x4 LB: > { %s22_s19 = sadd.s32 1, %s778_s16  ;;  %s25_s20 = sadd.s32 1, %s782_s17  ;;  %s786_s18 = sphi %s822_s18, %s13_s18   ;;  %s782_s17 = sphi %s820_s17, %s1001_s17   ;;  %s778_s16 = sphi %s818_s16, %s1000_s16   ;;  %s774_s15 = sphi %s816_s15, %s999_s15   ;;  %s770_s14 = sphi %s814_s14, %s998_s14   ;;  %s766_s13 = sphi %s812_s13, %s997_s13   ;;  %s762_s12 = sphi %s810_s12, %s996_s12  }
   0x5   : > { %p23_p0 = scmp.ge.s32.totalorder %s22_s19, 2  ;;  %p41_p1 = scmp.ne.s32.totalorder %s766_s13, %s762_s12 }
   0x6   : > { %p42_p2 = scmp.eq.s32.totalorder %s786_s18, 0  ;;  %s34_s24 = sadd.s32 1, %s766_s13 }
   0x7   : > { %s1003_s19 = smov (%p23_p0, %s22_s19), 0  ;;  %s1005_s20 = smov (!%p23_p0, %s25_s20), %s782_s17 }
   0x8   : > { %p43_p3 = por %p42_p2, %p41_p1  ;;  %p27_p4 = scmp.ge.s32.totalorder %s1005_s20, 2 }
   0x9   : > { %s30_s21 = ssub.s32 %s778_s16, %s1003_s19  ;;  %p557_p6 = scmp.ge.s32.totalorder %s786_s18, 4 }
   0xa   : > { %s1007_s20 = smov (%p27_p4, %s1005_s20), 0 }
   0xb   : > { %s29_s22 = ssub.s32 %s782_s17, %s1007_s20  ;;  %143 = sbr.rel (%p557_p6) target bundleno = 44 (0x2c), region = 24 }
   0xc   : > { %s31_s23 = sor.u32 %s30_s21, %s29_s22 }
   0xd   : > { %p32_p5 = scmp.eq.s32.totalorder %s31_s23, 0 }
   0xf   : > { %s861_s25 = scalar_select %p32_p5, %s766_s13, %s34_s24  }
  0x10   : > { %146 = sbr.rel (!%p43_p3) target bundleno = 44 (0x2c), region = 28  ;;  %s148_s26 = sand.u32 (%p43_p3), 1, %s766_s13  }
  0x11   : > { %s670_s27 = smul.u32 (%p43_p3), 160, %s148_s26  ;;  %s558_s28 = sshll.u32 (%p43_p3), %s778_s16, 2 }
  0x12   : > { %s671_s29 = smul.u32 (%p43_p3), 80, %s782_s17 }
  0x13   : > { %s875_s8 = scalar_lea.vmem (%p43_p3), [#allocation2], %s670_s27 }
  0x14   : > { %s153_s30 = sadd.s32 (%p43_p3), %s671_s29, %s558_s28 }
  0x15   : > { %s559_s4 = sshll.u32 %s153_s30, 2 }
  0x16   : > { %s870_s7 = scalar_lea.vmem %s992_s0, %s559_s4 }
  0x17   : > { %v168_v0 = vld [vmem:[%s870_s7] sm:$0xff]  ;;  %v170_v1 = vld [vmem:[%s870_s7 + $0x8] sm:$0xff] }
  0x18   : > { %v172_v2 = vld [vmem:[%s870_s7 + $0x20] sm:$0xff]  ;;  %169 = vst [vmem:[%s875_s8] sm:$0xff] %v168_v0  ;;  %v174_v3 = vld [vmem:[%s870_s7 + $0x28] sm:$0xff] }
  0x19   : > { %171 = vst [vmem:[%s875_s8 + $0x8] sm:$0xff] %v170_v1  ;;  %v176_v4 = vld [vmem:[%s870_s7 + $0x40] sm:$0xff]  ;;  %v178_v5 = vld [vmem:[%s870_s7 + $0x48] sm:$0xff] }
  0x1a   : > { %173 = vst [vmem:[%s875_s8 + $0x10] sm:$0xff] %v172_v2  ;;  %v180_v6 = vld [vmem:[%s870_s7 + $0x60] sm:$0xff]  ;;  %v182_v7 = vld [vmem:[%s870_s7 + $0x68] sm:$0xff] }
  0x1b   : > { %175 = vst [vmem:[%s875_s8 + $0x18] sm:$0xff] %v174_v3  ;;  %v184_v8 = vld [vmem:[%s870_s7 + $0x80] sm:$0xff]  ;;  %v186_v9 = vld [vmem:[%s870_s7 + $0x88] sm:$0xff] }
  0x1c   : > { %177 = vst [vmem:[%s875_s8 + $0x20] sm:$0xff] %v176_v4  ;;  %v188_v10 = vld [vmem:[%s870_s7 + $0xa0] sm:$0xff]  ;;  %v190_v11 = vld [vmem:[%s870_s7 + $0xa8] sm:$0xff] }
  0x1d   : > { %179 = vst [vmem:[%s875_s8 + $0x28] sm:$0xff] %v178_v5  ;;  %v192_v12 = vld [vmem:[%s870_s7 + $0xc0] sm:$0xff]  ;;  %v194_v13 = vld [vmem:[%s870_s7 + $0xc8] sm:$0xff] }
  0x1e   : > { %181 = vst [vmem:[%s875_s8 + $0x30] sm:$0xff] %v180_v6  ;;  %v196_v14 = vld [vmem:[%s870_s7 + $0xe0] sm:$0xff]  ;;  %v198_v15 = vld [vmem:[%s870_s7 + $0xe8] sm:$0xff] }
  0x1f   : > { %183 = vst [vmem:[%s875_s8 + $0x38] sm:$0xff] %v182_v7  ;;  %v200_v16 = vld [vmem:[%s870_s7 + $0x100] sm:$0xff]  ;;  %v202_v17 = vld [vmem:[%s870_s7 + $0x108] sm:$0xff] }
  0x20   : > { %185 = vst [vmem:[%s875_s8 + $0x40] sm:$0xff] %v184_v8  ;;  %v204_v18 = vld [vmem:[%s870_s7 + $0x120] sm:$0xff]  ;;  %v206_v19 = vld [vmem:[%s870_s7 + $0x128] sm:$0xff] }
  0x21   : > { %187 = vst [vmem:[%s875_s8 + $0x48] sm:$0xff] %v186_v9 }
  0x22   : > { %189 = vst [vmem:[%s875_s8 + $0x50] sm:$0xff] %v188_v10 }
  0x23   : > { %191 = vst [vmem:[%s875_s8 + $0x58] sm:$0xff] %v190_v11 }
  0x24   : > { %193 = vst [vmem:[%s875_s8 + $0x60] sm:$0xff] %v192_v12 }
  0x25   : > { %195 = vst [vmem:[%s875_s8 + $0x68] sm:$0xff] %v194_v13 }
  0x26   : > { %197 = vst [vmem:[%s875_s8 + $0x70] sm:$0xff] %v196_v14 }
  0x27   : > { %199 = vst [vmem:[%s875_s8 + $0x78] sm:$0xff] %v198_v15 }
  0x28   : > { %201 = vst [vmem:[%s875_s8 + $0x80] sm:$0xff] %v200_v16 }
  0x29   : > { %203 = vst [vmem:[%s875_s8 + $0x88] sm:$0xff] %v202_v17 }
  0x2a   : > { %205 = vst [vmem:[%s875_s8 + $0x90] sm:$0xff] %v204_v18 }
  0x2b   : > { %207 = vst [vmem:[%s875_s8 + $0x98] sm:$0xff] %v206_v19 }
  0x2c PF: > { %p560_p7 = scmp.ge.s32.totalorder %s786_s18, 1  ;;  %p212_p8 = scmp.lt.s32.totalorder %s786_s18, 5 }
  0x2e   : > { %p213_p9 = pnand %p560_p7, %p212_p8 }
  0x2f   : > { %s219_s9 = sand.u32 (!%p213_p9), 1, %s762_s12   ;;  %s561_s24 = sshll.u32 (!%p213_p9), %s770_s14, 2 }
  0x30   : > { %216 = sbr.rel (%p213_p9) target bundleno = 221 (0xdd), region = 51  ;;  %p248_p10 = scmp.lt.s32.totalorder (!%p213_p9), %s774_s15, 1 }
  0x31   : > { %s672_s10 = smul.u32 (!%p213_p9), 160, %s219_s9  ;;  %p250_p11 = scmp.lt.s32.totalorder (!%p213_p9), %s561_s24, 7 }
  0x33   : > { %s920_s22 = scalar_lea.vmem (!%p213_p9), [#allocation2], %s672_s10 }
  0x35   : > { %vm385_vm0 = vcmask 1044480   ;;  %vm386_vm1 = vcmask 1045504   ;;  %v788_v20 = vmov 65535   ;;  %v279_v22 = vld [vmem:[%s994_s2] sm:$0xff]  ;;  %v789_v23 = vmov 0   ;;  %s1009_s15 = smov (!%p248_p10, %s774_s15), 1 }
  0x36   : > { %v387_v21 = vsel %vm385_vm0, 4294967295, %v788_v20  ;;  %731 = vset.pattern.permute.xlu0 %v789_v23  ;;  %v630_v25 = vld [vmem:[%s920_s22 + $0x80] sm:$0xf]  ;;  %v668_v26 = vld [vmem:[%s920_s22 + $0x8c] sm:$0x30]  ;;  %vm381_vm2 = vcmask 613376  }
  0x37   : > { %v388_v24 = vsel %vm386_vm1, %v387_v21, 0  ;;  %282 = vperm.xlu0 %731, %v279_v22   ;;  %v666_v27 = vld [vmem:[%s920_s22 + $0x84] sm:$0xf]  ;;  %v631_v28 = vor.u32 %v668_v26, %v630_v25  ;;  %v632_v29 = vld [vmem:[%s920_s22 + $0x90] sm:$0x30]  ;;  %s1011_s24 = smov (!%p250_p11, %s561_s24), 7 }
  0x38   : > { %v638_v30 = vld [vmem:[%s920_s22 + $0x88] sm:$0xf]  ;;  %v669_v31 = vld [vmem:[%s920_s22 + $0x94] sm:$0x30]  ;;  %v635_v32 = vor.u32 %v666_v27, %v632_v29  ;;  %v667_v34 = vld [vmem:[%s920_s22 + $0x8c] sm:$0xf] }
  0x39   : > { %v639_v33 = vor.u32 %v669_v31, %v638_v30  ;;  %v640_v35 = vld [vmem:[%s920_s22 + $0x98] sm:$0x30]  ;;  %v614_v36 = vld [vmem:[%s920_s22 + $0x60] sm:$0xf]  ;;  %v390_v37 = vand.u32 %v631_v28, %v388_v24  ;;  %v664_v39 = vld [vmem:[%s920_s22 + $0x6c] sm:$0xf0] }
  0x3a   : > { %v643_v38 = vor.u32 %v667_v34, %v640_v35  ;;  %v662_v40 = vld [vmem:[%s920_s22 + $0x64] sm:$0xf]  ;;  %v616_v41 = vld [vmem:[%s920_s22 + $0x70] sm:$0xf0]  ;;  %v393_v42 = vand.u32 %v635_v32, %v388_v24  ;;  %v622_v44 = vld [vmem:[%s920_s22 + $0x68] sm:$0xf]  ;;  %v615_v48 = vor.u32 %v664_v39, %v614_v36 }
  0x3b   : > { %v396_v43 = vand.u32 %v639_v33, %v388_v24  ;;  %v665_v45 = vld [vmem:[%s920_s22 + $0x74] sm:$0xf0]  ;;  %v663_v46 = vld [vmem:[%s920_s22 + $0x6c] sm:$0xf]  ;;  %404 = vmatpush.bf16.msra.mxu0 %v390_v37  ;;  %v624_v49 = vld [vmem:[%s920_s22 + $0x78] sm:$0xf0]  ;;  %v619_v50 = vor.u32 %v662_v40, %v616_v41 }
  0x3c   : > { %v399_v47 = vand.u32 %v643_v38, %v388_v24  ;;  %417 = vmatpush.bf16.msra.mxu1 %v393_v42  ;;  %v623_v51 = vor.u32 %v665_v45, %v622_v44  ;;  %v598_v52 = vld [vmem:[%s920_s22 + $0x40] sm:$0xf]  ;;  %v660_v53 = vld [vmem:[%s920_s22 + $0x4c] sm:$0xf0]  ;;  %v658_v54 = vld [vmem:[%s920_s22 + $0x44] sm:$0xf]  ;;  %v627_v55 = vor.u32 %v663_v46, %v624_v49 }
  0x3d   : > { %430 = vmatpush.bf16.msra.mxu2 %v396_v43  ;;  %v600_v56 = vld [vmem:[%s920_s22 + $0x50] sm:$0xf0]  ;;  %v606_v57 = vld [vmem:[%s920_s22 + $0x48] sm:$0xf]  ;;  %v661_v58 = vld [vmem:[%s920_s22 + $0x54] sm:$0xf0]  ;;  %v599_v61 = vor.u32 %v660_v53, %v598_v52 }
  0x3e   : > { %443 = vmatpush.bf16.msra.mxu3 %v399_v47  ;;  %v659_v59 = vld [vmem:[%s920_s22 + $0x4c] sm:$0xf]  ;;  %v608_v60 = vld [vmem:[%s920_s22 + $0x58] sm:$0xf0]  ;;  %v603_v62 = vor.u32 %v658_v54, %v600_v56  ;;  %v607_v63 = vor.u32 %v661_v58, %v606_v57  ;;  %v582_v0 = vld [vmem:[%s920_s22 + $0x20] sm:$0xf] }
  0x3f   : > { %405 = vmatpush.bf16.msra.mxu0 %v615_v48  ;;  %v656_v1 = vld [vmem:[%s920_s22 + $0x2c] sm:$0xf0]  ;;  %v654_v2 = vld [vmem:[%s920_s22 + $0x24] sm:$0xf]  ;;  %v611_v3 = vor.u32 %v659_v59, %v608_v60  ;;  %v584_v4 = vld [vmem:[%s920_s22 + $0x30] sm:$0xf0] }
  0x40   : > { %418 = vmatpush.bf16.msra.mxu1 %v619_v50  ;;  %v590_v5 = vld [vmem:[%s920_s22 + $0x28] sm:$0xf]  ;;  %v657_v6 = vld [vmem:[%s920_s22 + $0x34] sm:$0xf0]  ;;  %v655_v7 = vld [vmem:[%s920_s22 + $0x2c] sm:$0xf]  ;;  %v583_v9 = vor.u32 %v656_v1, %v582_v0  ;;  %v587_v10 = vor.u32 %v654_v2, %v584_v4 }
  0x41   : > { %431 = vmatpush.bf16.msra.mxu2 %v623_v51  ;;  %v592_v8 = vld [vmem:[%s920_s22 + $0x38] sm:$0xf0]  ;;  %v591_v11 = vor.u32 %v657_v6, %v590_v5  ;;  %v566_v12 = vld [vmem:[%s920_s22] sm:$0xf]  ;;  %v652_v13 = vld [vmem:[%s920_s22 + $0xc] sm:$0xf0] }
  0x42   : > { %444 = vmatpush.bf16.msra.mxu3 %v627_v55  ;;  %v650_v14 = vld [vmem:[%s920_s22 + $0x4] sm:$0xf]  ;;  %v595_v15 = vor.u32 %v655_v7, %v592_v8  ;;  %v568_v16 = vld [vmem:[%s920_s22 + $0x10] sm:$0xf0]  ;;  %v574_v17 = vld [vmem:[%s920_s22 + $0x8] sm:$0xf]  ;;  %v567_v21 = vor.u32 %v652_v13, %v566_v12 }
  0x43   : > { %406 = vmatpush.bf16.msra.mxu0 %v599_v61  ;;  %v653_v18 = vld [vmem:[%s920_s22 + $0x14] sm:$0xf0]  ;;  %v651_v19 = vld [vmem:[%s920_s22 + $0xc] sm:$0xf]  ;;  %v576_v20 = vld [vmem:[%s920_s22 + $0x18] sm:$0xf0]  ;;  %v571_v22 = vor.u32 %v650_v14, %v568_v16 }
  0x44   : > { %419 = vmatpush.bf16.msra.mxu1 %v603_v62  ;;  %v575_v23 = vor.u32 %v653_v18, %v574_v17  ;;  %v579_v24 = vor.u32 %v651_v19, %v576_v20  ;;  %v258_v25 = vld [vmem:[%s993_s1] sm:$0xf]  ;;  %s562_s26 = sshll.u32 %s1009_s15, 3 }
  0x45   : > { %432 = vmatpush.bf16.msra.mxu2 %v607_v63  ;;  %s253_s27 = sadd.s32 %s562_s26, %s1011_s24 }
  0x46   : > { %445 = vmatpush.bf16.msra.mxu3 %v611_v3  ;;  %s563_s28 = sshll.u32 %s253_s27, 3 }
  0x47   : > { %407 = vmatpush.bf16.msra.mxu0 %v583_v9  ;;  %s255_s4 = scalar_lea.vmem %s995_s3, %s563_s28 }
  0x48   : > { %420 = vmatpush.bf16.msra.mxu1 %v587_v10 }
  0x49   : > { %433 = vmatpush.bf16.msra.mxu2 %v591_v11 }
  0x4a   : > { %446 = vmatpush.bf16.msra.mxu3 %v595_v15 }
  0x4b   : > { %408 = vmatpush.bf16.msra.mxu0 %v567_v21 }
  0x4c   : > { %421 = vmatpush.bf16.msra.mxu1 %v571_v22 }
  0x4d   : > { %434 = vmatpush.bf16.msra.mxu2 %v575_v23 }
  0x4e   : > { %447 = vmatpush.bf16.msra.mxu3 %v579_v24  ;;  %644 = vmatmul.msk.bf16.vlgmr.msra.gmra.mxu0 %vm381_vm2, %v258_v25 }
  0x4f   : > { %645 = vmatmul.msk.bf16.vlgmr.msra.gmra.mxu1 %vm381_vm2, %v258_v25 }
  0x50   : > { %646 = vmatmul.msk.bf16.vlgmr.msra.gmra.mxu2 %vm381_vm2, %v258_v25 }
  0x51   : > { %647 = vmatmul.msk.bf16.vlgmr.msra.gmra.mxu3 %vm381_vm2, %v258_v25 }
  0xa9   : > { %v283_v26 = vpop.permute.xlu0 %282 }
  0xcb   : > { %v410_v27 = vpop.f32.mrf.mxu0 }
  0xcc   : > { %v423_v28 = vpop.f32.mrf.mxu1  ;;  %v411_v29 = vadd.f32 %v410_v27, %v283_v26 }
  0xcd   : > { %v424_v30 = vadd.f32 %v423_v28, %v283_v26 }
  0xce   : > { %v453_v31 = vmax.f32 %v411_v29, 0.0 }
  0xcf   : > { %v454_v32 = vmax.f32 %v424_v30, 0.0 }
  0xd0   : > { %457 = vst [vmem:[%s255_s4] sm:$0xff] %v453_v31 }
  0xd1   : > { %458 = vst [vmem:[%s255_s4 + $0x8] sm:$0xff] %v454_v32 }
  0xd3   : > { %v436_v33 = vpop.f32.mrf.mxu2  ;;  %v412_v36 = vpop.f32.mrf.mxu0 }
  0xd4   : > { %v437_v34 = vadd.f32 %v436_v33, %v283_v26  ;;  %v449_v35 = vpop.f32.mrf.mxu3  ;;  %v425_v38 = vpop.f32.mrf.mxu1 }
  0xd5   : > { %v450_v37 = vadd.f32 %v449_v35, %v283_v26 }
  0xd6   : > { %v455_v39 = vmax.f32 %v437_v34, 0.0 }
  0xd7   : > { %v456_v40 = vmax.f32 %v450_v37, 0.0 }
  0xd8   : > { %459 = vst [vmem:[%s255_s4 + $0x10] sm:$0xff] %v455_v39 }
  0xd9   : > { %460 = vst [vmem:[%s255_s4 + $0x18] sm:$0xff] %v456_v40 }
  0xdb   : > { %v438_v41 = vpop.f32.mrf.mxu2 }
  0xdc   : > { %v451_v42 = vpop.f32.mrf.mxu3 }
  0xdd PF: > { %s13_s18 = sadd.s32 1, %s786_s18   ;;  %s996_s12 = smov %s766_s13 }
  0xde   : > { %p10_p12 = scmp.ge.s32.totalorder %s13_s18, 6   ;;  %s997_s13 = smov %s861_s25 }
  0xdf   : > { %s998_s14 = smov %s778_s16  ;;  %s999_s15 = smov %s782_s17 }
  0xe0   : > { %s1000_s16 = smov %s1003_s19  ;;  %s1001_s17 = smov %s1007_s20 }
  0xe1   :  { %12 = sbr.rel (!%p10_p12) target bundleno = 4 (0x4), region = 90 }

// kernel: elastic_deform_with_style.8
= control target key start
LH: loop header
LB: loop body
LE: loop exit
PB: predicated region body
PF: predicated region fallthrough
CT: control target
= control target key end

     0   :  { %s438_s18 = smov 0   ;;  %s470_s0 = inlined_call_operand.vmem [shape: f32[2,1,2048], index: 0, kind: input, shape index: {}]   ;;  %s471_s1 = inlined_call_operand.vmem [shape: f32[2,1,2048], index: 1, kind: input, shape index: {}]   ;;  %s472_s2 = inlined_call_operand.vmem [shape: f32[2,1,2048], index: 2, kind: input, shape index: {}]   ;;  %s473_s3 = inlined_call_operand.vmem [shape: f32[2,1,2048], index: 3, kind: input, shape index: {}]   ;;  %s474_s4 = inlined_call_operand.vmem [shape: f32[1,1,2048], index: 4, kind: input, shape index: {}]   ;;  %s475_s5 = inlined_call_operand.vmem [shape: f32[2,1,2048], index: 5, kind: output, shape index: {}]  }
   0x1 LB: > { %s380_s19 = sadd.s32 4294967295, %s406_s18   ;;  %p384_p0 = scmp.ge.s32.totalorder %s406_s18, 1  ;;  %s406_s18 = sphi %s438_s18, %s15_s18  }
   0x2   : > { %p213_p1 = scmp.lt.s32.totalorder %s406_s18, 3 }
   0x4   : > { %p214_p2 = pnand %p384_p0, %p213_p1 }
   0x5   : > { %p251_p3 = scmp.lt.s32.totalorder (!%p214_p2), %s380_s19, 1 }
   0x6   : > { %217 = sbr.rel (%p214_p2) target bundleno = 26 (0x1a), region = 40 }
   0xb   : > { %s477_s19 = smov (!%p251_p3, %s380_s19), 1  ;;  %v285_v11 = vld [vmem:[%s474_s4] sm:$0xff]  ;;  %v286_v14 = vld [vmem:[%s474_s4 + $0x8] sm:$0xff] }
   0xc   : > { %s385_s20 = sshll.u32 %s477_s19, 4 }
   0xd   : > { %s254_s23 = scalar_lea.vmem %s470_s0, %s385_s20  ;;  %s258_s26 = scalar_lea.vmem %s471_s1, %s385_s20 }
   0xe   : > { %s262_s29 = scalar_lea.vmem %s472_s2, %s385_s20  ;;  %s266_s7 = scalar_lea.vmem %s473_s3, %s385_s20  ;;  %v271_v0 = vld [vmem:[%s254_s23] sm:$0xff]  ;;  %v272_v2 = vld [vmem:[%s254_s23 + $0x8] sm:$0xff] }
   0xf   : > { %v273_v1 = vld [vmem:[%s258_s26] sm:$0xff]  ;;  %v274_v5 = vld [vmem:[%s258_s26 + $0x8] sm:$0xff]  ;;  %s270_s14 = scalar_lea.vmem %s475_s5, %s385_s20 }
  0x10   : > { %v275_v3 = vadd.f32 %v273_v1, %v271_v0  ;;  %v277_v4 = vld [vmem:[%s262_s29] sm:$0xff]  ;;  %v276_v7 = vadd.f32 %v274_v5, %v272_v2  ;;  %v278_v8 = vld [vmem:[%s262_s29 + $0x8] sm:$0xff] }
  0x11   : > { %v281_v6 = vld [vmem:[%s266_s7] sm:$0xff]  ;;  %v282_v10 = vld [vmem:[%s266_s7 + $0x8] sm:$0xff] }
  0x12   : > { %v279_v9 = vadd.f32 %v277_v4, %v275_v3  ;;  %v280_v12 = vadd.f32 %v278_v8, %v276_v7 }
  0x14   : > { %v283_v13 = vadd.f32 %v281_v6, %v279_v9  ;;  %v284_v15 = vadd.f32 %v282_v10, %v280_v12 }
  0x16   : > { %v287_v16 = vmul.f32 %v285_v11, %v283_v13  ;;  %v288_v17 = vmul.f32 %v286_v14, %v284_v15 }
  0x18   : > { %289 = vst [vmem:[%s270_s14] sm:$0xff] %v287_v16 }
  0x19   : > { %290 = vst [vmem:[%s270_s14 + $0x8] sm:$0xff] %v288_v17 }
  0x1a PF: > { %s15_s18 = sadd.s32 1, %s406_s18  }
  0x1b   : > { %p12_p4 = scmp.ge.s32.totalorder %s15_s18, 4  }
  0x1d   :  { %14 = sbr.rel (!%p12_p4) target bundleno = 1 (0x1), region = 79 }

// kernel: elastic_deform_with_style.9
= control target key start
LH: loop header
LB: loop body
LE: loop exit
PB: predicated region body
PF: predicated region fallthrough
CT: control target
= control target key end

     0   :  { %s733_s12 = smov 0   ;;  %s735_s13 = smov 0   ;;  %s827_s0 = inlined_call_operand.vmem [shape: bf16[2,200,256], index: 0, kind: input, shape index: {}]   ;;  %s828_s1 = inlined_call_operand.vmem [shape: bf16[8,200], index: 1, kind: input, shape index: {}]   ;;  %s829_s2 = inlined_call_operand.vmem [shape: f32[8,1], index: 2, kind: input, shape index: {}]   ;;  %s830_s3 = inlined_call_operand.vmem [shape: f32[2,8,256], index: 3, kind: output, shape index: {}]  }
   0x1   :  { %s737_s14 = smov 0  }
   0x2 LB: > { %s25_s15 = sadd.s32 1, %s706_s13  ;;  %p532_p0 = scmp.ge.s32.totalorder %s710_s14, 1  ;;  %s710_s14 = sphi %s737_s14, %s13_s14   ;;  %s706_s13 = sphi %s735_s13, %s832_s13   ;;  %s702_s12 = sphi %s733_s12, %s831_s12  }
   0x3   : > { %p27_p1 = scmp.ge.s32.totalorder %s25_s15, 2  ;;  %p158_p2 = scmp.lt.s32.totalorder %s710_s14, 3 }
   0x5   : > { %s834_s15 = smov (%p27_p1, %s25_s15), 0  ;;  %p159_p3 = pnand %p532_p0, %p158_p2 }
   0x6   : > { %p191_p4 = scmp.lt.s32.totalorder (!%p159_p3), %s702_s12, 1 }
   0x7   : > { %162 = sbr.rel (%p159_p3) target bundleno = 191 (0xbf), region = 32 }
   0xc   : > { %s836_s12 = smov (!%p191_p4, %s702_s12), 1  ;;  %vm378_vm0 = vcmask 1043456   ;;  %v211_v53 = vld [vmem:[%s828_s1] sm:$0xff]  ;;  %v712_v63 = vmov 0   ;;  %vm374_vm1 = vcmask 588800  }
   0xd   : > { %s661_s16 = smul.u32 200, %s836_s12  ;;  %v237_v58 = vld [vmem:[%s829_s2] sm:$0xff]  ;;  %687 = vset.pattern.permute.xlu0 %v712_v63  ;;  %s636_s24 = sshll.u32 %s836_s12, 4 }
   0xe   : > { %240 = vperm.xlu0 %687, %v237_v58   ;;  %s208_s27 = scalar_lea.vmem %s830_s3, %s636_s24 }
   0xf   : > { %s757_s19 = scalar_lea.vmem %s827_s0, %s661_s16 }
  0x10   : > { %v594_v0 = vld [vmem:[%s757_s19 + $0x70] sm:$0xf]  ;;  %v652_v1 = vld [vmem:[%s757_s19 + $0x74] sm:$0xf0]  ;;  %v651_v2 = vld [vmem:[%s757_s19 + $0x74] sm:$0xf] }
  0x11   : > { %v595_v3 = vor.u32 %v652_v1, %v594_v0  ;;  %v596_v4 = vld [vmem:[%s757_s19 + $0x78] sm:$0xf0]  ;;  %v586_v5 = vld [vmem:[%s757_s19 + $0x60] sm:$0xf]  ;;  %v650_v6 = vld [vmem:[%s757_s19 + $0x64] sm:$0xf0] }
  0x12   : > { %v599_v7 = vor.u32 %v651_v2, %v596_v4  ;;  %v649_v8 = vld [vmem:[%s757_s19 + $0x64] sm:$0xf]  ;;  %v588_v9 = vld [vmem:[%s757_s19 + $0x68] sm:$0xf0]  ;;  %v587_v11 = vor.u32 %v650_v6, %v586_v5  ;;  %v578_v15 = vld [vmem:[%s757_s19 + $0x50] sm:$0xf] }
  0x13   : > { %v236_v10 = vld [vmem:[%s757_s19 + $0xc0] sm:$0xff]  ;;  %385 = vmatpush.bf16.msra.mxu0 %v595_v3  ;;  %v591_v14 = vor.u32 %v649_v8, %v588_v9  ;;  %v648_v16 = vld [vmem:[%s757_s19 + $0x54] sm:$0xf0]  ;;  %v647_v17 = vld [vmem:[%s757_s19 + $0x54] sm:$0xf]  ;;  %v245_v3 = vunpack.c.h.b16 %v211_v53 }
  0x14   : > { %v323_v12 = vunpack.c.h.b16 %v236_v10  ;;  %v322_v13 = vunpack.c.l.b16 %v236_v10  ;;  %411 = vmatpush.bf16.msra.mxu2 %v599_v7  ;;  %v580_v19 = vld [vmem:[%s757_s19 + $0x58] sm:$0xf0]  ;;  %v659_v20 = vld [vmem:[%s757_s19 + $0xb4] sm:$0xf]  ;;  %v579_v24 = vor.u32 %v648_v16, %v578_v15  ;;  %v626_v26 = vld [vmem:[%s757_s19 + $0xb0] sm:$0xf] }
  0x15   : > { %v628_v21 = vld [vmem:[%s757_s19 + $0xb8] sm:$0xf0]  ;;  %v660_v27 = vld [vmem:[%s757_s19 + $0xb4] sm:$0xf0]  ;;  %v583_v28 = vor.u32 %v647_v17, %v580_v19  ;;  %v570_v30 = vld [vmem:[%s757_s19 + $0x40] sm:$0xf] }
  0x16   : > { %v349_v18 = vpack.c.b16 %v323_v12, %v323_v12  ;;  %v348_v22 = vpack.c.b16 %v322_v13, %v322_v13  ;;  %v631_v29 = vor.u32 %v659_v20, %v628_v21  ;;  %v646_v31 = vld [vmem:[%s757_s19 + $0x44] sm:$0xf0]  ;;  %v645_v32 = vld [vmem:[%s757_s19 + $0x44] sm:$0xf]  ;;  %v572_v33 = vld [vmem:[%s757_s19 + $0x48] sm:$0xf0]  ;;  %v627_v36 = vor.u32 %v660_v27, %v626_v26 }
  0x17   : > { %386 = vmatpush.bf16.msra.mxu0 %v587_v11  ;;  %v657_v34 = vld [vmem:[%s757_s19 + $0xa4] sm:$0xf]  ;;  %v620_v35 = vld [vmem:[%s757_s19 + $0xa8] sm:$0xf0]  ;;  %v618_v37 = vld [vmem:[%s757_s19 + $0xa0] sm:$0xf]  ;;  %v571_v39 = vor.u32 %v646_v31, %v570_v30  ;;  %v575_v40 = vor.u32 %v645_v32, %v572_v33  ;;  %v247_v11 = vpack.c.b16 %v245_v3, %v245_v3 }
  0x18   : > { %v383_v23 = vsel %vm378_vm0, %v349_v18, 0  ;;  %v380_v25 = vsel %vm378_vm0, %v348_v22, 0  ;;  %412 = vmatpush.bf16.msra.mxu2 %v591_v14  ;;  %v658_v38 = vld [vmem:[%s757_s19 + $0xa4] sm:$0xf0]  ;;  %v623_v41 = vor.u32 %v657_v34, %v620_v35  ;;  %v562_v42 = vld [vmem:[%s757_s19 + $0x30] sm:$0xf]  ;;  %v244_v18 = vunpack.c.l.b16 %v211_v53 }
  0x19   : > { %427 = vmatpush.bf16.msra.mxu3 %v383_v23  ;;  %401 = vmatpush.bf16.msra.mxu1 %v380_v25  ;;  %v644_v43 = vld [vmem:[%s757_s19 + $0x34] sm:$0xf0]  ;;  %v643_v44 = vld [vmem:[%s757_s19 + $0x34] sm:$0xf]  ;;  %v564_v45 = vld [vmem:[%s757_s19 + $0x38] sm:$0xf0]  ;;  %v619_v48 = vor.u32 %v658_v38, %v618_v37 }
  0x1a   : > { %v655_v46 = vld [vmem:[%s757_s19 + $0x94] sm:$0xf]  ;;  %v612_v47 = vld [vmem:[%s757_s19 + $0x98] sm:$0xf0]  ;;  %v610_v49 = vld [vmem:[%s757_s19 + $0x90] sm:$0xf]  ;;  %v563_v51 = vor.u32 %v644_v43, %v562_v42  ;;  %v567_v54 = vor.u32 %v643_v44, %v564_v45  ;;  %v246_v21 = vpack.c.b16 %v244_v18, %v244_v18 }
  0x1b   : > { %387 = vmatpush.bf16.msra.mxu0 %v579_v24  ;;  %v656_v50 = vld [vmem:[%s757_s19 + $0x94] sm:$0xf0]  ;;  %v554_v52 = vld [vmem:[%s757_s19 + $0x20] sm:$0xf]  ;;  %v615_v55 = vor.u32 %v655_v46, %v612_v47  ;;  %v642_v56 = vld [vmem:[%s757_s19 + $0x24] sm:$0xf0] }
  0x1c   : > { %413 = vmatpush.bf16.msra.mxu2 %v583_v28  ;;  %v641_v57 = vld [vmem:[%s757_s19 + $0x24] sm:$0xf]  ;;  %v556_v59 = vld [vmem:[%s757_s19 + $0x28] sm:$0xf0]  ;;  %v611_v62 = vor.u32 %v656_v50, %v610_v49  ;;  %v602_v0 = vld [vmem:[%s757_s19 + $0x80] sm:$0xf]  ;;  %v555_v2 = vor.u32 %v642_v56, %v554_v52 }
  0x1d   : > { %428 = vmatpush.bf16.msra.mxu3 %v631_v29  ;;  %402 = vmatpush.bf16.msra.mxu1 %v627_v36  ;;  %v653_v60 = vld [vmem:[%s757_s19 + $0x84] sm:$0xf]  ;;  %v604_v61 = vld [vmem:[%s757_s19 + $0x88] sm:$0xf0]  ;;  %v654_v1 = vld [vmem:[%s757_s19 + $0x84] sm:$0xf0]  ;;  %v559_v4 = vor.u32 %v641_v57, %v556_v59 }
  0x1e   : > { %v607_v5 = vor.u32 %v653_v60, %v604_v61  ;;  %v546_v6 = vld [vmem:[%s757_s19 + $0x10] sm:$0xf]  ;;  %v640_v7 = vld [vmem:[%s757_s19 + $0x14] sm:$0xf0]  ;;  %v639_v8 = vld [vmem:[%s757_s19 + $0x14] sm:$0xf]  ;;  %v603_v10 = vor.u32 %v654_v1, %v602_v0 }
  0x1f   : > { %388 = vmatpush.bf16.msra.mxu0 %v571_v39  ;;  %v548_v9 = vld [vmem:[%s757_s19 + $0x18] sm:$0xf0]  ;;  %v547_v12 = vor.u32 %v640_v7, %v546_v6  ;;  %v538_v14 = vld [vmem:[%s757_s19] sm:$0xf]  ;;  %v638_v15 = vld [vmem:[%s757_s19 + $0x4] sm:$0xf0] }
  0x20   : > { %414 = vmatpush.bf16.msra.mxu2 %v575_v40  ;;  %v551_v13 = vor.u32 %v639_v8, %v548_v9  ;;  %v637_v16 = vld [vmem:[%s757_s19 + $0x4] sm:$0xf]  ;;  %v540_v17 = vld [vmem:[%s757_s19 + $0x8] sm:$0xf0]  ;;  %v539_v19 = vor.u32 %v638_v15, %v538_v14 }
  0x21   : > { %429 = vmatpush.bf16.msra.mxu3 %v623_v41  ;;  %403 = vmatpush.bf16.msra.mxu1 %v619_v48  ;;  %v543_v20 = vor.u32 %v637_v16, %v540_v17 }
  0x23   : > { %389 = vmatpush.bf16.msra.mxu0 %v563_v51 }
  0x24   : > { %415 = vmatpush.bf16.msra.mxu2 %v567_v54 }
  0x25   : > { %430 = vmatpush.bf16.msra.mxu3 %v615_v55  ;;  %404 = vmatpush.bf16.msra.mxu1 %v611_v62 }
  0x27   : > { %390 = vmatpush.bf16.msra.mxu0 %v555_v2 }
  0x28   : > { %416 = vmatpush.bf16.msra.mxu2 %v559_v4 }
  0x29   : > { %431 = vmatpush.bf16.msra.mxu3 %v607_v5  ;;  %405 = vmatpush.bf16.msra.mxu1 %v603_v10 }
  0x2b   : > { %391 = vmatpush.bf16.msra.mxu0 %v547_v12 }
  0x2c   : > { %633 = vmatmul.msk.bf16.vlgmr.msra.gmra.mxu3 %vm374_vm1, %v247_v11  ;;  %417 = vmatpush.bf16.msra.mxu2 %v551_v13 }
  0x2d   : > { %632 = vmatmul.msk.bf16.vlgmr.msra.gmra.mxu1 %vm374_vm1, %v247_v11 }
  0x2f   : > { %392 = vmatpush.bf16.msra.mxu0 %v539_v19 }
  0x30   : > { %418 = vmatpush.bf16.msra.mxu2 %v543_v20 }
  0x32   : > { %393 = vmatmul.bf16.vlgmr.msra.gmra.mxu0 %v246_v21 }
  0x33   : > { %419 = vmatmul.bf16.vlgmr.msra.gmra.mxu2 %v246_v21 }
  0x80   : > { %v241_v23 = vpop.permute.xlu0 %240 }
  0xaa   : > { %v407_v22 = vpop.f32.mrf.mxu1 }
  0xaf   : > { %v433_v24 = vpop.f32.mrf.mxu3  ;;  %v394_v25 = vpop.f32.mrf.mxu0 }
  0xb0   : > { %v395_v26 = vadd.f32 %v394_v25, %v241_v23 }
  0xb2   : > { %v409_v27 = vpop.f32.mrf.mxu1  ;;  %v408_v28 = vadd.f32 %v407_v22, %v395_v26 }
  0xb4   : > { %v437_v29 = vmax.f32 %v408_v28, 0.0 }
  0xb6   : > { %439 = vst [vmem:[%s208_s27] sm:$0xff] %v437_v29  ;;  %v420_v30 = vpop.f32.mrf.mxu2 }
  0xb7   : > { %v435_v31 = vpop.f32.mrf.mxu3  ;;  %v421_v32 = vadd.f32 %v420_v30, %v241_v23  ;;  %v396_v33 = vpop.f32.mrf.mxu0 }
  0xb9   : > { %v434_v34 = vadd.f32 %v433_v24, %v421_v32 }
  0xbb   : > { %v438_v35 = vmax.f32 %v434_v34, 0.0 }
  0xbd   : > { %440 = vst [vmem:[%s208_s27 + $0x8] sm:$0xff] %v438_v35 }
  0xbe   : > { %v422_v36 = vpop.f32.mrf.mxu2 }
  0xbf PF: > { %s13_s14 = sadd.s32 1, %s710_s14   ;;  %s831_s12 = smov %s706_s13 }
  0xc0   : > { %p10_p5 = scmp.ge.s32.totalorder %s13_s14, 4   ;;  %s832_s13 = smov %s834_s15 }
  0xc2   :  { %12 = sbr.rel (!%p10_p5) target bundleno = 2 (0x2), region = 62 }

// kernel: elastic_deform_with_style.12
= control target key start
LH: loop header
LB: loop body
LE: loop exit
PB: predicated region body
PF: predicated region fallthrough
CT: control target
= control target key end

     0   :  { %12 = vsyncpa [#allocation3], 0  ;;  %s750_s24 = smov 0   ;;  %s821_s0 = inlined_call_operand.vmem [shape: f32[4], index: 0, kind: input, shape index: {}]   ;;  %s822_s1 = inlined_call_operand.vmem [shape: f32[4,20,20], index: 1, kind: input, shape index: {}]   ;;  %s823_s2 = inlined_call_operand.vmem [shape: bf16[32,20], index: 2, kind: input, shape index: {}]   ;;  %s824_s3 = inlined_call_operand.vmem [shape: bf16[20,32], index: 3, kind: input, shape index: {}]   ;;  %s825_s4 = inlined_call_operand.vmem [shape: bf16[32,32], index: 4, kind: input, shape index: {}, may-alias: {4,5}]   ;;  %s826_s5 = inlined_call_operand.vmem [shape: bf16[32,32], index: 5, kind: input, shape index: {}, may-alias: {4,5}]   ;;  %s827_s6 = inlined_call_operand.vmem [shape: f32[4,32,32], index: 6, kind: input, shape index: {}]   ;;  %s828_s7 = inlined_call_operand.vmem [shape: f32[4,32,32], index: 7, kind: output, shape index: {}]  }
   0x1 LB: > { %s756_s25 = sadd.s32 4294967295, %s707_s24   ;;  %p597_p0 = scmp.ge.s32.totalorder %s707_s24, 1  ;;  %s707_s24 = sphi %s750_s24, %s18_s24  }
   0x2   : > { %p206_p1 = scmp.lt.s32.totalorder %s707_s24, 5  ;;  %s218_s28 = sshll.u32 %s821_s0, 4  ;;  %s219_s28 = int_to_ptr.vmem [resolvable:$true] %s218_s28 }
   0x3   : > { %p663_p3 = scmp.eq.s32.totalorder %s756_s25, 0  ;;  %s709_s29 = smov [#allocation2]  }
   0x4   : > { %p207_p2 = pnand %p597_p0, %p206_p1 }
   0x6   : > { %p659_p4 = pneg %p207_p2  ;;  %259 = sbr.rel (%p207_p2) target bundleno = 639 (0x27f), region = 48 }
   0x8   : > { %p660_p5 = pnand %p663_p3, %p659_p4 }
   0xa   : > { %662 = dma.vmem_to_smem (!%p660_p5), %s219_s28, 16, %s709_s29, [#allocation3]  }
   0xb   : > { %702 = dma.done.wait (%p663_p3), [#allocation3], 16  }
   0xc   : > { %704 = vsyncadd (%p663_p3), [#allocation3], 4294967280 }
   0xd   : > { %266 = sfence }
   0xe   : > { %p298_p6 = scmp.lt.s32.totalorder %s756_s25, 3  ;;  %vm341_vm0 = vcmask 1041408   ;;  %v647_v6 = vld [vmem:[%s823_s2] sm:$0xff]  ;;  %vm334_vm1 = vcmask 162816   ;;  %v648_v7 = vld [vmem:[%s823_s2 + $0x8] sm:$0xff]  ;;  %s314_s20 = sld [smem:[#allocation2 + %s756_s25]] }
   0xf   : > { %v368_v8 = vld [vmem:[%s824_s3 + $0x8] sm:$0x3]  ;;  %v649_v12 = vld [vmem:[%s824_s3] sm:$0xff]  ;;  %vm431_vm2 = vcmask 261120  }
  0x10   : > { %s766_s30 = scalar_select %p298_p6, %s756_s25, 3  ;;  %v374_v9 = vunpack.c.l.b16 %v368_v8  ;;  %v650_v34 = vld [vmem:[%s825_s4] sm:$0xff]  ;;  %v651_v35 = vld [vmem:[%s825_s4 + $0x8] sm:$0xff] }
  0x11   : > { %v653_v36 = vld [vmem:[%s826_s5 + $0x8] sm:$0xff]  ;;  %v652_v37 = vld [vmem:[%s826_s5] sm:$0xff] }
  0x12   : > { %s654_s8 = smul.u32 24, %s766_s30  ;;  %v376_v10 = vpack.c.b16 %v374_v9, %v374_v9  ;;  %487 = vmatpush.bf16.msra.mxu3 %v653_v36 }
  0x14   : > { %s302_s11 = scalar_lea.vmem %s822_s1, %s654_s8  ;;  %v385_v11 = vsel %vm341_vm0, %v376_v10, 0  ;;  %v410_v26 = vstv %s314_s20  ;;  %s645_s8 = sshll.u32 %s766_s30, 5 }
  0x15   : > { %v321_v0 = vld [vmem:[%s302_s11 + $0x10] sm:$0xf]  ;;  %v319_v2 = vld [vmem:[%s302_s11] sm:$0xff]  ;;  %v320_v3 = vld [vmem:[%s302_s11 + $0x8] sm:$0xff]  ;;  %393 = vmatpush.bf16.msra.mxu1 %v385_v11  ;;  %s307_s11 = scalar_lea.vmem %s827_s6, %s645_s8  ;;  %s312_s14 = scalar_lea.vmem %s828_s7, %s645_s8 }
  0x16   : > { %v323_v1 = vpack.c.bf16 %v321_v0, %v321_v0  ;;  %v322_v5 = vpack.c.bf16 %v320_v3, %v319_v2  ;;  %488 = vmatpush.bf16.msra.mxu3 %v652_v37  ;;  %v504_v45 = vld [vmem:[%s307_s11] sm:$0xff]  ;;  %v505_v49 = vld [vmem:[%s307_s11 + $0x8] sm:$0xff]  ;;  %v506_v53 = vld [vmem:[%s307_s11 + $0x10] sm:$0xff] }
  0x17   : > { %v507_v57 = vld [vmem:[%s307_s11 + $0x18] sm:$0xff] }
  0x18   : > { %v343_v4 = vsel %vm341_vm0, %v323_v1, 0 }
  0x19   : > { %351 = vmatpush.bf16.msra.mxu0 %v343_v4  ;;  %394 = vmatpush.bf16.msra.mxu1 %v649_v12 }
  0x1d   : > { %352 = vmatpush.bf16.msra.mxu0 %v322_v5 }
  0x20   : > { %615 = vmatmul.msk.bf16.vlgmr.msra.gmra.mxu0 %vm334_vm1, %v647_v6 }
  0x30   : > { %616 = vmatmul.msk.bf16.gmra.mxu0 %vm334_vm1, %v648_v7 }
  0x9d   : > { %v354_v13 = vpop.f32.mrf.mxu0 }
  0xa5   : > { %v356_v14 = vpop.f32.mrf.mxu0 }
  0xa6   : > { %v364_v15 = vpack.c.bf16 %v356_v14, %v354_v13 }
  0xa8   : > { %621 = vmatmul.msk.bf16.vlgmr.msra.gmra.mxu1 %vm334_vm1, %v364_v15 }
  0xad   : > { %v359_v16 = vpop.f32.mrf.mxu0 }
  0xb5   : > { %v361_v17 = vpop.f32.mrf.mxu0 }
  0xb6   : > { %v365_v18 = vpack.c.bf16 %v361_v17, %v359_v16 }
  0xb8   : > { %622 = vmatmul.msk.bf16.gmra.mxu1 %vm334_vm1, %v365_v18 }
 0x125   : > { %v396_v19 = vpop.f32.mrf.mxu1 }
 0x12d   : > { %v398_v20 = vpop.f32.mrf.mxu1 }
 0x135   : > { %v401_v21 = vpop.f32.mrf.mxu1 }
 0x136   : > { %674 = vtanh.f32 %v401_v21 }
 0x137   : > { %676 = vtanh.f32 %v398_v20 }
 0x13c   : > { %v675_v23 = vpop.eup %674 }
 0x13d   : > { %v403_v22 = vpop.f32.mrf.mxu1  ;;  %v677_v24 = vpop.eup %676  ;;  %v413_v27 = vmul.f32 %v675_v23, %v410_v26 }
 0x13e   : > { %678 = vtanh.f32 %v403_v22  ;;  %v412_v31 = vmul.f32 %v677_v24, %v410_v26 }
 0x13f   : > { %680 = vtanh.f32 %v396_v19 }
 0x144   : > { %v679_v25 = vpop.eup %678 }
 0x145   : > { %v414_v28 = vmul.f32 %v679_v25, %v410_v26  ;;  %v681_v29 = vpop.eup %680 }
 0x146   : > { %v411_v32 = vmul.f32 %v681_v29, %v410_v26 }
 0x147   : > { %v416_v30 = vpack.c.bf16 %v414_v28, %v413_v27 }
 0x148   : > { %v415_v33 = vpack.c.bf16 %v412_v31, %v411_v32 }
 0x149   : > { %444 = vmatpush.bf16.msra.mxu2 %v416_v30 }
 0x14d   : > { %445 = vmatpush.bf16.msra.mxu2 %v415_v33 }
 0x150   : > { %631 = vmatmul.msk.bf16.vlgmr.msra.gmra.mxu2 %vm431_vm2, %v650_v34 }
 0x160   : > { %632 = vmatmul.msk.bf16.gmra.mxu2 %vm431_vm2, %v651_v35 }
 0x1d3   : > { %v447_v38 = vpop.f32.mrf.mxu2 }
 0x1db   : > { %v449_v39 = vpop.f32.mrf.mxu2 }
 0x1dc   : > { %v457_v40 = vpack.c.bf16 %v449_v39, %v447_v38 }
 0x1de   : > { %641 = vmatmul.msk.bf16.vlgmr.msra.gmra.mxu3 %vm431_vm2, %v457_v40 }
 0x1e3   : > { %v452_v41 = vpop.f32.mrf.mxu2 }
 0x1eb   : > { %v454_v42 = vpop.f32.mrf.mxu2 }
 0x1ec   : > { %v458_v43 = vpack.c.bf16 %v454_v42, %v452_v41 }
 0x1ee   : > { %642 = vmatmul.msk.bf16.gmra.mxu3 %vm431_vm2, %v458_v43 }
 0x261   : > { %v490_v44 = vpop.f32.mrf.mxu3 }
 0x262   : > { %v500_v46 = vmul.f32 0.012345679, %v490_v44 }
 0x264   : > { %v508_v47 = vadd.f32 %v504_v45, %v500_v46 }
 0x266   : > { %512 = vst.msk [vmem:[%s312_s14] sm:$0xff] %vm431_vm2, %v508_v47 }
 0x269   : > { %v492_v48 = vpop.f32.mrf.mxu3 }
 0x26a   : > { %v501_v50 = vmul.f32 0.012345679, %v492_v48 }
 0x26c   : > { %v509_v51 = vadd.f32 %v505_v49, %v501_v50 }
 0x26e   : > { %513 = vst.msk [vmem:[%s312_s14 + $0x8] sm:$0xff] %vm431_vm2, %v509_v51 }
 0x271   : > { %v495_v52 = vpop.f32.mrf.mxu3 }
 0x272   : > { %v502_v54 = vmul.f32 0.012345679, %v495_v52 }
 0x274   : > { %v510_v55 = vadd.f32 %v506_v53, %v502_v54 }
 0x276   : > { %514 = vst.msk [vmem:[%s312_s14 + $0x10] sm:$0xff] %vm431_vm2, %v510_v55 }
 0x279   : > { %v497_v56 = vpop.f32.mrf.mxu3 }
 0x27a   : > { %v503_v58 = vmul.f32 0.012345679, %v497_v56 }
 0x27c   : > { %v511_v59 = vadd.f32 %v507_v57, %v503_v58 }
 0x27e   : > { %515 = vst.msk [vmem:[%s312_s14 + $0x18] sm:$0xff] %vm431_vm2, %v511_v59 }
 0x27f PF: > { %s18_s24 = sadd.s32 1, %s707_s24  }
 0x280   : > { %p15_p7 = scmp.ge.s32.totalorder %s18_s24, 6  }
 0x282   :  { %17 = sbr.rel (!%p15_p7) target bundleno = 1 (0x1), region = 86 }
 0x287   :  { %537 = vsyncpa [#allocation3], 1 }
 0x288   :  { %539 = vsyncpa [#allocation3 + $0x1], 1 }

// kernel: elastic_deform_with_style.11
= control target key start
LH: loop header
LB: loop body
LE: loop exit
PB: predicated region body
PF: predicated region fallthrough
CT: control target
= control target key end

     0   :  { %s548_s18 = smov 0   ;;  %s585_s0 = inlined_call_operand.vmem [shape: bf16[2,8,256], index: 0, kind: input, shape index: {}]   ;;  %s586_s1 = inlined_call_operand.vmem [shape: bf16[32,8], index: 1, kind: input, shape index: {}]   ;;  %s587_s2 = inlined_call_operand.vmem [shape: f32[2,32,1], index: 2, kind: input, shape index: {}]   ;;  %s588_s3 = inlined_call_operand.vmem [shape: bf16[2,32], index: 3, kind: input, shape index: {}]   ;;  %s589_s4 = inlined_call_operand.vmem [shape: f32[2,1], index: 4, kind: input, shape index: {}]   ;;  %s590_s5 = inlined_call_operand.vmem [shape: f32[2,2,256], index: 5, kind: output, shape index: {}]  }
   0x1 LB: > { %s465_s19 = sadd.s32 4294967295, %s515_s18   ;;  %p469_p0 = scmp.ge.s32.totalorder %s515_s18, 1  ;;  %s515_s18 = sphi %s548_s18, %s15_s18  }
   0x2   : > { %p197_p1 = scmp.lt.s32.totalorder %s515_s18, 3 }
   0x4   : > { %p198_p2 = pnand %p469_p0, %p197_p1 }
   0x5   : > { %p230_p3 = scmp.lt.s32.totalorder (!%p198_p2), %s465_s19, 1 }
   0x6   : > { %201 = sbr.rel (%p198_p2) target bundleno = 326 (0x146), region = 40 }
   0xb   : > { %v517_v0 = vmov 0   ;;  %s592_s19 = smov (!%p230_p3, %s465_s19), 1  ;;  %vm297_vm0 = vcmask 1043456   ;;  %v495_v10 = vld [vmem:[%s586_s1] sm:$0xff]  ;;  %vm290_vm1 = vcmask 64512   ;;  %v496_v13 = vld [vmem:[%s586_s1 + $0x8] sm:$0xff] }
   0xc   : > { %507 = vset.pattern.permute.xlu1 %v517_v0  ;;  %506 = vset.pattern.permute.xlu0 %v517_v0  ;;  %s492_s20 = sshll.u32 %s592_s19, 3  ;;  %s493_s21 = sshll.u32 %s592_s19, 5  ;;  %v355_v16 = vld [vmem:[%s589_s4] sm:$0x3]  ;;  %vm361_vm2 = vcmask 261120   ;;  %vm394_vm3 = vcmask 1041408  }
   0xd   : > { %508 = vset.pattern.permute.xlu2 %v517_v0  ;;  %s234_s24 = scalar_lea.vmem %s585_s0, %s492_s20  ;;  %s239_s27 = scalar_lea.vmem %s587_s2, %s493_s21  ;;  %v354_v47 = vld [vmem:[%s588_s3] sm:$0x1] }
   0xe   : > { %v250_v1 = vld [vmem:[%s234_s24] sm:$0xff]  ;;  %v253_v3 = vld [vmem:[%s239_s27 + $0x10] sm:$0xff]  ;;  %v252_v11 = vld [vmem:[%s239_s27 + $0x8] sm:$0xff]  ;;  %358 = vperm.xlu2 %508, %v355_v16   ;;  %s494_s11 = sshll.u32 %s592_s19, 2 }
   0xf   : > { %v251_v2 = vld [vmem:[%s239_s27] sm:$0xff]  ;;  %v286_v4 = vunpack.c.l.b16 %v250_v1  ;;  %v287_v5 = vunpack.c.h.b16 %v250_v1  ;;  %267 = vperm.xlu0 %506, %v253_v3   ;;  %v254_v12 = vld [vmem:[%s239_s27 + $0x18] sm:$0xff]  ;;  %s244_s14 = scalar_lea.vmem %s590_s5, %s494_s11 }
  0x10   : > { %257 = vperm.xlu1 %507, %v251_v2  }
  0x11   : > { %v288_v6 = vpack.c.b16 %v286_v4, %v286_v4  ;;  %v289_v7 = vpack.c.b16 %v287_v5, %v287_v5 }
  0x13   : > { %v299_v8 = vsel %vm297_vm0, %v288_v6, 0  ;;  %v302_v9 = vsel %vm297_vm0, %v289_v7, 0 }
  0x14   : > { %311 = vmatpush.bf16.msra.mxu0 %v299_v8  ;;  %330 = vmatpush.bf16.msra.mxu1 %v302_v9 }
  0x17   : > { %484 = vmatmul.msk.bf16.vlgmr.msra.gmra.mxu0 %vm290_vm1, %v495_v10  ;;  %486 = vmatmul.msk.bf16.vlgmr.msra.gmra.mxu1 %vm290_vm1, %v495_v10 }
  0x18   : > { %262 = vperm.xlu1 %507, %v252_v11   ;;  %272 = vperm.xlu0 %506, %v254_v12  }
  0x27   : > { %485 = vmatmul.msk.bf16.gmra.mxu0 %vm290_vm1, %v496_v13  ;;  %487 = vmatmul.msk.bf16.gmra.mxu1 %vm290_vm1, %v496_v13 }
  0x68   : > { %v359_v48 = vpop.permute.xlu2 %358 }
  0x81   : > { %v268_v20 = vpop.permute.xlu0 %267 }
  0x82   : > { %v258_v19 = vpop.permute.xlu1 %257 }
  0x8a   : > { %v263_v23 = vpop.permute.xlu1 %262  ;;  %v273_v24 = vpop.permute.xlu0 %272 }
  0x94   : > { %v313_v14 = vpop.f32.mrf.mxu0  ;;  %v332_v15 = vpop.f32.mrf.mxu1 }
  0x95   : > { %v314_v33 = vadd.f32 %v313_v14, %v258_v19  ;;  %v333_v34 = vadd.f32 %v332_v15, %v258_v19 }
  0x97   : > { %v342_v43 = vmax.f32 %v314_v33, 0.0  ;;  %v343_v44 = vmax.f32 %v333_v34, 0.0 }
  0x9c   : > { %v315_v17 = vpop.f32.mrf.mxu0  ;;  %v334_v18 = vpop.f32.mrf.mxu1 }
  0x9d   : > { %v316_v29 = vadd.f32 %v315_v17, %v263_v23  ;;  %v335_v30 = vadd.f32 %v334_v18, %v263_v23 }
  0x9f   : > { %v344_v39 = vmax.f32 %v316_v29, 0.0  ;;  %v345_v40 = vmax.f32 %v335_v30, 0.0 }
  0xa1   : > { %v350_v45 = vpack.c.bf16 %v344_v39, %v342_v43  ;;  %v351_v46 = vpack.c.bf16 %v345_v40, %v343_v44 }
  0xa4   : > { %v318_v21 = vpop.f32.mrf.mxu0  ;;  %v337_v22 = vpop.f32.mrf.mxu1 }
  0xa5   : > { %v319_v25 = vadd.f32 %v318_v21, %v268_v20  ;;  %v338_v26 = vadd.f32 %v337_v22, %v268_v20 }
  0xa7   : > { %v346_v35 = vmax.f32 %v319_v25, 0.0  ;;  %v347_v36 = vmax.f32 %v338_v26, 0.0 }
  0xac   : > { %v320_v27 = vpop.f32.mrf.mxu0  ;;  %v339_v28 = vpop.f32.mrf.mxu1 }
  0xad   : > { %v321_v31 = vadd.f32 %v320_v27, %v273_v24  ;;  %v340_v32 = vadd.f32 %v339_v28, %v273_v24 }
  0xaf   : > { %v348_v37 = vmax.f32 %v321_v31, 0.0  ;;  %v349_v38 = vmax.f32 %v340_v32, 0.0 }
  0xb1   : > { %v352_v41 = vpack.c.bf16 %v348_v37, %v346_v35  ;;  %v353_v42 = vpack.c.bf16 %v349_v38, %v347_v36 }
  0xb3   : > { %371 = vmatpush.bf16.msra.mxu2 %v352_v41  ;;  %384 = vmatpush.bf16.msra.mxu3 %v353_v42 }
  0xb7   : > { %372 = vmatpush.bf16.msra.mxu2 %v350_v45  ;;  %385 = vmatpush.bf16.msra.mxu3 %v351_v46 }
  0xba   : > { %488 = vmatmul.msk.bf16.vlgmr.msra.gmra.mxu2 %vm361_vm2, %v354_v47  ;;  %489 = vmatmul.msk.bf16.vlgmr.msra.gmra.mxu3 %vm361_vm2, %v354_v47 }
 0x13d   : > { %v374_v49 = vpop.f32.mrf.mxu2  ;;  %v387_v50 = vpop.f32.mrf.mxu3 }
 0x13e   : > { %v388_v51 = vadd.f32 %v387_v50, %v359_v48  ;;  %v375_v52 = vadd.f32 %v374_v49, %v359_v48 }
 0x140   : > { %v393_v53 = vrot.slane %v388_v51, 6 }
 0x142   : > { %v395_v54 = vsel %vm394_vm3, %v375_v52, %v393_v53 }
 0x143   : > { %397 = vst [vmem:[%s244_s14] sm:$0xf] %v395_v54 }
 0x145   : > { %v376_v55 = vpop.f32.mrf.mxu2  ;;  %v389_v56 = vpop.f32.mrf.mxu3 }
 0x146 PF: > { %s15_s18 = sadd.s32 1, %s515_s18  }
 0x147   : > { %p12_p4 = scmp.ge.s32.totalorder %s15_s18, 4  }
 0x149   :  { %14 = sbr.rel (!%p12_p4) target bundleno = 1 (0x1), region = 73 }

// kernel: elastic_deform_with_style.13
= control target key start
LH: loop header
LB: loop body
LE: loop exit
PB: predicated region body
PF: predicated region fallthrough
CT: control target
= control target key end

     0   :  { %s1247_s12 = smov 0   ;;  %s1249_s13 = smov 0   ;;  %s1757_s0 = inlined_call_operand.vmem [shape: f32[2,1,1024], index: 0, kind: input, shape index: {}]   ;;  %s1758_s1 = inlined_call_operand.vmem [shape: f32[2,1,1024], index: 1, kind: input, shape index: {}]   ;;  %s1759_s2 = inlined_call_operand.vmem [shape: f32[2,96,32], index: 2, kind: input, shape index: {}]   ;;  %s1760_s3 = inlined_call_operand.vmem [shape: f32[2,3,1024], index: 3, kind: output, shape index: {}]  }
   0x1   :  { %s1251_s14 = smov 0   ;;  %s1253_s15 = smov 0  }
   0x2   :  { %s1255_s16 = smov 0  }
   0x3 LB: > { %s22_s17 = sadd.s32 1, %s1217_s14  ;;  %s25_s18 = sadd.s32 1, %s1221_s15  ;;  %s1225_s16 = sphi %s1255_s16, %s13_s16   ;;  %s1221_s15 = sphi %s1253_s15, %s1764_s15   ;;  %s1217_s14 = sphi %s1251_s14, %s1763_s14   ;;  %s1213_s13 = sphi %s1249_s13, %s1762_s13   ;;  %s1209_s12 = sphi %s1247_s12, %s1761_s12  }
   0x4   : > { %p23_p0 = scmp.ge.s32.totalorder %s22_s17, 2  ;;  %p1081_p1 = scmp.ge.s32.totalorder %s1225_s16, 1 }
   0x5   : > { %p183_p2 = scmp.lt.s32.totalorder %s1225_s16, 5 }
   0x6   : > { %s1766_s17 = smov (%p23_p0, %s22_s17), 0  ;;  %s1768_s18 = smov (!%p23_p0, %s25_s18), %s1221_s15 }
   0x7   : > { %p184_p3 = pnand %p1081_p1, %p183_p2  ;;  %p27_p4 = scmp.ge.s32.totalorder %s1768_s18, 2 }
   0x8   : > { %s1082_s19 = sshll.u32 (!%p184_p3), %s1209_s12, 2  ;;  %p228_p5 = scmp.lt.s32.totalorder (!%p184_p3), %s1213_s13, 1 }
   0x9   : > { %s1770_s18 = smov (%p27_p4, %s1768_s18), 0  ;;  %187 = sbr.rel (%p184_p3) target bundleno = 307 (0x133), region = 32 }
   0xa   : > { %p230_p6 = scmp.lt.s32.totalorder (!%p184_p3), %s1082_s19, 7 }
   0xe   : > { %s1772_s13 = smov (!%p228_p5, %s1213_s13), 1  ;;  %s1774_s19 = smov (!%p230_p6, %s1082_s19), 7  ;;  %v282_v5 = vlaneseq }
   0xf   : > { %s1083_s20 = sshll.u32 %s1772_s13, 3  ;;  %s1142_s25 = smul.u32 96, %s1772_s13 }
  0x10   : > { %s1280_s21 = sadd.s32 %s1083_s20, %s1774_s19  ;;  %v1286_v8 = vshrl.u32 %v282_v5, 7 }
  0x11   : > { %s234_s24 = scalar_lea.vmem %s1757_s0, %s1280_s21  ;;  %s1400_s28 = scalar_lea.vmem %s1759_s2, %s1142_s25 }
  0x12   : > { %v260_v0 = vld [vmem:[%s234_s24] sm:$0xf]  ;;  %v1289_v12 = vadd.s32 24, %v1286_v8  ;;  %v1292_v13 = vadd.s32 16, %v1286_v8  ;;  %v1295_v14 = vadd.s32 8, %v1286_v8  ;;  %s243_s4 = scalar_lea.vmem %s1758_s1, %s1280_s21  ;;  %s1089_s5 = sshll.u32 %s1280_s21, 2 }
  0x13   : > { %v262_v1 = vadd.f32 1.0, %v260_v0  ;;  %s258_s8 = scalar_lea.vmem %s1760_s3, %s1089_s5 }
  0x15   : > { %v263_v2 = vmul.f32 32.0, %v262_v1 }
  0x17   : > { %v1090_v3 = vadd.f32 -1.0, %v263_v2 }
  0x19   : > { %v265_v4 = vmul.f32 0.5, %v1090_v3 }
  0x1b   : > { %v266_v6 = vmax.f32 %v265_v4, 0.0 }
  0x1d   : > { %v267_v7 = vmin.f32 %v266_v6, 31.0 }
  0x1f   : > { %v274_v9 = vfloor.f32 %v267_v7 }
  0x21   : > { %v276_v10 = vsub.f32 %v267_v7, %v274_v9  ;;  %v1144_v11 = vcvt.f32.s32 %v274_v9 }
  0x23   : > { %v277_v15 = vsub.f32 1.0, %v276_v10  ;;  %v1297_v16 = vperm.slane %v1144_v11, 0  ;;  %v332_v17 = vadd.s32 1, %v1144_v11  ;;  %v1299_v18 = vperm.slane %v276_v10, 0 }
  0x24   : > { %v1301_v19 = vperm.slane %v1144_v11, 1  ;;  %v1303_v20 = vperm.slane %v276_v10, 1  ;;  %v1305_v21 = vperm.slane %v1144_v11, 2  ;;  %v1307_v22 = vperm.slane %v276_v10, 2 }
  0x25   : > { %vm303_vm0 = vcmp.eq.s32.totalorder %v1289_v12, %v1297_v16  ;;  %v1311_v23 = vperm.slane %v277_v15, 0  ;;  %v1313_v24 = vperm.slane %v332_v17, 0  ;;  %v1315_v25 = vperm.slane %v277_v15, 1 }
  0x26   : > { %vm304_vm1 = vcmp.eq.s32.totalorder %v1289_v12, %v1301_v19  ;;  %v1319_v26 = vperm.slane %v332_v17, 1  ;;  %vm305_vm2 = vcmp.eq.s32.totalorder %v1289_v12, %v1305_v21  ;;  %v1323_v27 = vperm.slane %v277_v15, 2 }
  0x27   : > { %v328_v28 = vsel %vm303_vm0, %v1311_v23, 0.0  ;;  %vm349_vm3 = vcmp.eq.s32.totalorder %v1289_v12, %v1313_v24  ;;  %v329_v29 = vsel %vm304_vm1, %v1315_v25, 0.0  ;;  %v1329_v30 = vperm.slane %v332_v17, 2 }
  0x28   : > { %v374_v31 = vsel %vm349_vm3, %v1299_v18, 0.0  ;;  %vm350_vm4 = vcmp.eq.s32.totalorder %v1289_v12, %v1319_v26  ;;  %v330_v32 = vsel %vm305_vm2, %v1323_v27, 0.0  ;;  %v1335_v33 = vperm.slane %v1144_v11, 3  ;;  %v501_v11 = vld [vmem:[%s1400_s28] sm:$0xff] }
  0x29   : > { %v390_v34 = vadd.f32 %v374_v31, %v328_v28  ;;  %v375_v35 = vsel %vm350_vm4, %v1303_v20, 0.0  ;;  %vm351_vm5 = vcmp.eq.s32.totalorder %v1289_v12, %v1329_v30  ;;  %v1340_v36 = vperm.slane %v277_v15, 3  ;;  %v508_v28 = vld [vmem:[%s1400_s28 + $0x38] sm:$0xff]  ;;  %v511_v31 = vld [vmem:[%s1400_s28 + $0x50] sm:$0xff] }
  0x2a   : > { %v391_v37 = vadd.f32 %v375_v35, %v329_v29  ;;  %v376_v38 = vsel %vm351_vm5, %v1307_v22, 0.0  ;;  %vm306_vm6 = vcmp.eq.s32.totalorder %v1289_v12, %v1335_v33  ;;  %v1345_v39 = vperm.slane %v332_v17, 3  ;;  %v509_v29 = vld [vmem:[%s1400_s28 + $0x40] sm:$0xff] }
  0x2b   : > { %562 = vmatpush.msra.mxu0 %v390_v34  ;;  %v392_v40 = vadd.f32 %v376_v38, %v330_v32  ;;  %v331_v41 = vsel %vm306_vm6, %v1340_v36, 0.0  ;;  %v1348_v42 = vperm.slane %v276_v10, 3  ;;  %vm299_vm7 = vcmp.eq.s32.totalorder %v1292_v13, %v1297_v16  ;;  %v261_v32 = vld [vmem:[%s243_s4] sm:$0xf]  ;;  %v512_v34 = vld [vmem:[%s1400_s28 + $0x58] sm:$0xff] }
  0x2c   : > { %615 = vmatpush.msra.mxu1 %v391_v37  ;;  %vm352_vm8 = vcmp.eq.s32.totalorder %v1289_v12, %v1345_v39  ;;  %v324_v43 = vsel %vm299_vm7, %v1311_v23, 0.0  ;;  %vm345_vm9 = vcmp.eq.s32.totalorder %v1292_v13, %v1313_v24  ;;  %vm300_vm10 = vcmp.eq.s32.totalorder %v1292_v13, %v1301_v19 }
  0x2d   : > { %668 = vmatpush.msra.mxu2 %v392_v40  ;;  %v377_v44 = vsel %vm352_vm8, %v1348_v42, 0.0  ;;  %v370_v45 = vsel %vm345_vm9, %v1299_v18, 0.0  ;;  %v325_v46 = vsel %vm300_vm10, %v1315_v25, 0.0  ;;  %vm346_vm11 = vcmp.eq.s32.totalorder %v1292_v13, %v1319_v26 }
  0x2e   : > { %v393_v47 = vadd.f32 %v377_v44, %v331_v41  ;;  %v386_v48 = vadd.f32 %v370_v45, %v324_v43  ;;  %v371_v49 = vsel %vm346_vm11, %v1303_v20, 0.0  ;;  %vm301_vm12 = vcmp.eq.s32.totalorder %v1292_v13, %v1305_v21 }
  0x2f   : > { %v387_v50 = vadd.f32 %v371_v49, %v325_v46  ;;  %v326_v51 = vsel %vm301_vm12, %v1323_v27, 0.0  ;;  %vm347_vm13 = vcmp.eq.s32.totalorder %v1292_v13, %v1329_v30  ;;  %vm302_vm14 = vcmp.eq.s32.totalorder %v1292_v13, %v1335_v33 }
  0x30   : > { %721 = vmatpush.msra.mxu3 %v393_v47  ;;  %563 = vmatpush.msra.mxu0 %v386_v48  ;;  %v372_v52 = vsel %vm347_vm13, %v1307_v22, 0.0  ;;  %v327_v53 = vsel %vm302_vm14, %v1340_v36, 0.0  ;;  %vm348_vm15 = vcmp.eq.s32.totalorder %v1292_v13, %v1345_v39  ;;  %vm295_vm0 = vcmp.eq.s32.totalorder %v1295_v14, %v1297_v16 }
  0x31   : > { %vm513_vm1 = vcmask 261120   ;;  %616 = vmatpush.msra.mxu1 %v387_v50  ;;  %v388_v54 = vadd.f32 %v372_v52, %v326_v51  ;;  %v373_v55 = vsel %vm348_vm15, %v1348_v42, 0.0  ;;  %v320_v56 = vsel %vm295_vm0, %v1311_v23, 0.0 }
  0x32   : > { %vm341_vm2 = vcmp.eq.s32.totalorder %v1295_v14, %v1313_v24  ;;  %v389_v57 = vadd.f32 %v373_v55, %v327_v53  ;;  %vm296_vm3 = vcmp.eq.s32.totalorder %v1295_v14, %v1301_v19  ;;  %vm342_vm4 = vcmp.eq.s32.totalorder %v1295_v14, %v1319_v26 }
  0x33   : > { %v366_v58 = vsel %vm341_vm2, %v1299_v18, 0.0  ;;  %669 = vmatpush.msra.mxu2 %v388_v54  ;;  %v321_v60 = vsel %vm296_vm3, %v1315_v25, 0.0  ;;  %v367_v61 = vsel %vm342_vm4, %v1303_v20, 0.0  ;;  %vm297_vm5 = vcmp.eq.s32.totalorder %v1295_v14, %v1305_v21 }
  0x34   : > { %v382_v59 = vadd.f32 %v366_v58, %v320_v56  ;;  %722 = vmatpush.msra.mxu3 %v389_v57  ;;  %v383_v62 = vadd.f32 %v367_v61, %v321_v60  ;;  %v322_v63 = vsel %vm297_vm5, %v1323_v27, 0.0  ;;  %vm343_vm6 = vcmp.eq.s32.totalorder %v1295_v14, %v1329_v30 }
  0x35   : > { %vm298_vm7 = vcmp.eq.s32.totalorder %v1295_v14, %v1335_v33  ;;  %v368_v0 = vsel %vm343_vm6, %v1307_v22, 0.0  ;;  %vm344_vm8 = vcmp.eq.s32.totalorder %v1295_v14, %v1345_v39  ;;  %vm291_vm9 = vcmp.eq.s32.totalorder %v1286_v8, %v1297_v16 }
  0x36   : > { %564 = vmatpush.msra.mxu0 %v382_v59  ;;  %v323_v1 = vsel %vm298_vm7, %v1340_v36, 0.0  ;;  %617 = vmatpush.msra.mxu1 %v383_v62  ;;  %v384_v2 = vadd.f32 %v368_v0, %v322_v63  ;;  %v369_v3 = vsel %vm344_vm8, %v1348_v42, 0.0  ;;  %v316_v4 = vsel %vm291_vm9, %v1311_v23, 0.0  ;;  %v503_v23 = vld [vmem:[%s1400_s28 + $0x10] sm:$0xff] }
  0x37   : > { %vm337_vm10 = vcmp.eq.s32.totalorder %v1286_v8, %v1313_v24  ;;  %v385_v5 = vadd.f32 %v369_v3, %v323_v1  ;;  %vm292_vm11 = vcmp.eq.s32.totalorder %v1286_v8, %v1301_v19  ;;  %vm338_vm12 = vcmp.eq.s32.totalorder %v1286_v8, %v1319_v26  ;;  %v504_v24 = vld [vmem:[%s1400_s28 + $0x18] sm:$0xff]  ;;  %v506_v26 = vld [vmem:[%s1400_s28 + $0x28] sm:$0xff] }
  0x38   : > { %v362_v6 = vsel %vm337_vm10, %v1299_v18, 0.0  ;;  %670 = vmatpush.msra.mxu2 %v384_v2  ;;  %v317_v9 = vsel %vm292_vm11, %v1315_v25, 0.0  ;;  %v363_v10 = vsel %vm338_vm12, %v1303_v20, 0.0  ;;  %vm293_vm13 = vcmp.eq.s32.totalorder %v1286_v8, %v1305_v21  ;;  %v505_v25 = vld [vmem:[%s1400_s28 + $0x20] sm:$0xff] }
  0x39   : > { %v378_v7 = vadd.f32 %v362_v6, %v316_v4  ;;  %723 = vmatpush.msra.mxu3 %v385_v5  ;;  %v379_v15 = vadd.f32 %v363_v10, %v317_v9  ;;  %v318_v16 = vsel %vm293_vm13, %v1323_v27, 0.0  ;;  %vm339_vm14 = vcmp.eq.s32.totalorder %v1286_v8, %v1329_v30  ;;  %v507_v27 = vld [vmem:[%s1400_s28 + $0x30] sm:$0xff]  ;;  %v510_v30 = vld [vmem:[%s1400_s28 + $0x48] sm:$0xff] }
  0x3a   : > { %vm294_vm15 = vcmp.eq.s32.totalorder %v1286_v8, %v1335_v33  ;;  %v364_v17 = vsel %vm339_vm14, %v1307_v22, 0.0  ;;  %vm340_vm0 = vcmp.eq.s32.totalorder %v1286_v8, %v1345_v39  ;;  %v502_v22 = vld [vmem:[%s1400_s28 + $0x8] sm:$0xff]  ;;  %v268_v33 = vadd.f32 1.0, %v261_v32 }
  0x3b   : > { %565 = vmatpush.msra.mxu0 %v378_v7  ;;  %v319_v18 = vsel %vm294_vm15, %v1340_v36, 0.0  ;;  %618 = vmatpush.msra.mxu1 %v379_v15  ;;  %v380_v19 = vadd.f32 %v364_v17, %v318_v16  ;;  %v365_v20 = vsel %vm340_vm0, %v1348_v42, 0.0 }
  0x3c   : > { %1092 = vmatmul.msk.f32.vlgmr.msra.gmra.mxu0 %vm513_vm1, %v501_v11  ;;  %v381_v21 = vadd.f32 %v365_v20, %v319_v18  ;;  %1104 = vmatmul.msk.f32.vlgmr.msra.gmra.mxu1 %vm513_vm1, %v501_v11  ;;  %v269_v35 = vmul.f32 32.0, %v268_v33 }
  0x3d   : > { %671 = vmatpush.msra.mxu2 %v380_v19 }
  0x3e   : > { %724 = vmatpush.msra.mxu3 %v381_v21  ;;  %1116 = vmatmul.msk.f32.vlgmr.msra.gmra.mxu2 %vm513_vm1, %v501_v11  ;;  %v1091_v36 = vadd.f32 -1.0, %v269_v35 }
  0x3f   : > { %1128 = vmatmul.msk.f32.vlgmr.msra.gmra.mxu3 %vm513_vm1, %v501_v11 }
  0x40   : > { %v271_v37 = vmul.f32 0.5, %v1091_v36 }
  0x42   : > { %v272_v38 = vmax.f32 %v271_v37, 0.0 }
  0x44   : > { %1093 = vmatmul.msk.f32.gmra.mxu0 %vm513_vm1, %v502_v22  ;;  %1105 = vmatmul.msk.f32.gmra.mxu1 %vm513_vm1, %v502_v22  ;;  %v273_v39 = vmin.f32 %v272_v38, 31.0 }
  0x46   : > { %1117 = vmatmul.msk.f32.gmra.mxu2 %vm513_vm1, %v502_v22  ;;  %v275_v40 = vfloor.f32 %v273_v39 }
  0x47   : > { %1129 = vmatmul.msk.f32.gmra.mxu3 %vm513_vm1, %v502_v22 }
  0x48   : > { %v1146_v41 = vcvt.f32.s32 %v275_v40  ;;  %v278_v42 = vsub.f32 %v273_v39, %v275_v40 }
  0x4a   : > { %v439_v43 = vadd.s32 1, %v1146_v41  ;;  %v1495_v44 = vperm.slane %v1146_v41, 0  ;;  %v279_v45 = vsub.f32 1.0, %v278_v42  ;;  %v1503_v48 = vperm.slane %v278_v42, 0 }
  0x4b   : > { %v1505_v49 = vperm.slane %v1146_v41, 1  ;;  %v1517_v54 = vperm.slane %v278_v42, 1  ;;  %v1519_v55 = vperm.slane %v1146_v41, 2  ;;  %v1529_v58 = vperm.slane %v1146_v41, 3 }
  0x4c   : > { %1094 = vmatmul.msk.f32.gmra.mxu0 %vm513_vm1, %v503_v23  ;;  %1106 = vmatmul.msk.f32.gmra.mxu1 %vm513_vm1, %v503_v23  ;;  %v1497_v46 = vperm.slane %v439_v43, 0  ;;  %v1499_v47 = vperm.slane %v279_v45, 0  ;;  %vm398_vm2 = vcmp.eq.s32.totalorder %v1286_v8, %v1495_v44  ;;  %v1509_v50 = vperm.slane %v439_v43, 1 }
  0x4d   : > { %v1512_v52 = vperm.slane %v279_v45, 1  ;;  %vm399_vm3 = vcmp.eq.s32.totalorder %v1286_v8, %v1505_v49  ;;  %v1523_v56 = vperm.slane %v439_v43, 2  ;;  %vm402_vm5 = vcmp.eq.s32.totalorder %v1295_v14, %v1495_v44 }
  0x4e   : > { %1118 = vmatmul.msk.f32.gmra.mxu2 %vm513_vm1, %v503_v23  ;;  %v423_v51 = vsel %vm398_vm2, %v1499_v47, 0.0  ;;  %vm445_vm4 = vcmp.eq.s32.totalorder %v1286_v8, %v1509_v50  ;;  %vm448_vm6 = vcmp.eq.s32.totalorder %v1295_v14, %v1497_v46  ;;  %vm403_vm7 = vcmp.eq.s32.totalorder %v1295_v14, %v1505_v49 }
  0x4f   : > { %1130 = vmatmul.msk.f32.gmra.mxu3 %vm513_vm1, %v503_v23  ;;  %vm449_vm8 = vcmp.eq.s32.totalorder %v1295_v14, %v1509_v50  ;;  %v424_v60 = vsel %vm399_vm3, %v1512_v52, 0.0  ;;  %v1538_v62 = vperm.slane %v279_v45, 2  ;;  %v1540_v63 = vperm.slane %v278_v42, 2 }
  0x50   : > { %v470_v0 = vsel %vm445_vm4, %v1517_v54, 0.0  ;;  %vm400_vm9 = vcmp.eq.s32.totalorder %v1286_v8, %v1519_v55  ;;  %v427_v1 = vsel %vm402_vm5, %v1499_v47, 0.0  ;;  %v473_v2 = vsel %vm448_vm6, %v1503_v48, 0.0 }
  0x51   : > { %vm446_vm10 = vcmp.eq.s32.totalorder %v1286_v8, %v1523_v56  ;;  %v1549_v3 = vperm.slane %v279_v45, 3  ;;  %v428_v4 = vsel %vm403_vm7, %v1512_v52, 0.0  ;;  %v474_v5 = vsel %vm449_vm8, %v1517_v54, 0.0 }
  0x52   : > { %vm401_vm11 = vcmp.eq.s32.totalorder %v1286_v8, %v1529_v58  ;;  %v1555_v6 = vperm.slane %v439_v43, 3  ;;  %v1557_v7 = vadd.f32 %v470_v0, %v424_v60  ;;  %v425_v9 = vsel %vm400_vm9, %v1538_v62, 0.0 }
  0x53   : > { %v1560_v10 = vadd.f32 %v473_v2, %v427_v1  ;;  %v471_v11 = vsel %vm446_vm10, %v1540_v63, 0.0  ;;  %v1563_v15 = vperm.slane %v278_v42, 3  ;;  %v1565_v16 = vadd.f32 %v474_v5, %v428_v4 }
  0x54   : > { %1095 = vmatmul.msk.f32.gmra.mxu0 %vm513_vm1, %v504_v24  ;;  %1107 = vmatmul.msk.f32.gmra.mxu1 %vm513_vm1, %v504_v24  ;;  %vm404_vm12 = vcmp.eq.s32.totalorder %v1295_v14, %v1519_v55  ;;  %v426_v18 = vsel %vm401_vm11, %v1549_v3, 0.0  ;;  %vm406_vm13 = vcmp.eq.s32.totalorder %v1292_v13, %v1495_v44  ;;  %vm452_vm14 = vcmp.eq.s32.totalorder %v1292_v13, %v1497_v46 }
  0x55   : > { %vm447_vm15 = vcmp.eq.s32.totalorder %v1286_v8, %v1555_v6  ;;  %vm450_vm0 = vcmp.eq.s32.totalorder %v1295_v14, %v1523_v56  ;;  %vm407_vm2 = vcmp.eq.s32.totalorder %v1292_v13, %v1505_v49  ;;  %v429_v23 = vsel %vm404_vm12, %v1538_v62, 0.0 }
  0x56   : > { %1119 = vmatmul.msk.f32.gmra.mxu2 %vm513_vm1, %v504_v24  ;;  %vm405_vm3 = vcmp.eq.s32.totalorder %v1295_v14, %v1529_v58  ;;  %vm451_vm4 = vcmp.eq.s32.totalorder %v1295_v14, %v1555_v6  ;;  %v432_v14 = vsel %vm407_vm2, %v1512_v52, 0.0  ;;  %v472_v32 = vsel %vm447_vm15, %v1563_v15, 0.0 }
  0x57   : > { %1131 = vmatmul.msk.f32.gmra.mxu3 %vm513_vm1, %v504_v24  ;;  %v476_v35 = vsel %vm451_vm4, %v1563_v15, 0.0  ;;  %v1608_v36 = vadd.f32 %v471_v11, %v425_v9  ;;  %vm408_vm5 = vcmp.eq.s32.totalorder %v1292_v13, %v1519_v55  ;;  %vm454_vm6 = vcmp.eq.s32.totalorder %v1292_v13, %v1523_v56 }
  0x58   : > { %vm410_vm7 = vcmp.eq.s32.totalorder %v1289_v12, %v1495_v44  ;;  %vm456_vm8 = vcmp.eq.s32.totalorder %v1289_v12, %v1497_v46  ;;  %vm411_vm9 = vcmp.eq.s32.totalorder %v1289_v12, %v1505_v49  ;;  %v433_v42 = vsel %vm408_vm5, %v1538_v62, 0.0 }
  0x59   : > { %v479_v43 = vsel %vm454_vm6, %v1540_v63, 0.0  ;;  %vm409_vm10 = vcmp.eq.s32.totalorder %v1292_v13, %v1529_v58  ;;  %vm457_vm11 = vcmp.eq.s32.totalorder %v1289_v12, %v1509_v50  ;;  %vm455_vm12 = vcmp.eq.s32.totalorder %v1292_v13, %v1555_v6 }
  0x5a   : > { %v434_v9 = vsel %vm409_vm10, %v1549_v3, 0.0  ;;  %v480_v11 = vsel %vm455_vm12, %v1563_v15, 0.0  ;;  %v1658_v49 = vadd.f32 %v479_v43, %v433_v42  ;;  %vm413_vm15 = vcmp.eq.s32.totalorder %v1289_v12, %v1529_v58 }
  0x5b   : > { %vm936_vm2 = vcmask 1043456   ;;  %vm949_vm4 = vcmask 1042434   ;;  %vm951_vm5 = vcmask 1046534  }
  0x5c   : > { %1096 = vmatmul.msk.f32.gmra.mxu0 %vm513_vm1, %v505_v25  ;;  %1108 = vmatmul.msk.f32.gmra.mxu1 %vm513_vm1, %v505_v25 }
  0x5e   : > { %1120 = vmatmul.msk.f32.gmra.mxu2 %vm513_vm1, %v505_v25 }
  0x5f   : > { %1132 = vmatmul.msk.f32.gmra.mxu3 %vm513_vm1, %v505_v25 }
  0x64   : > { %1097 = vmatmul.msk.f32.gmra.mxu0 %vm513_vm1, %v506_v26  ;;  %1109 = vmatmul.msk.f32.gmra.mxu1 %vm513_vm1, %v506_v26 }
  0x66   : > { %1121 = vmatmul.msk.f32.gmra.mxu2 %vm513_vm1, %v506_v26 }
  0x67   : > { %1133 = vmatmul.msk.f32.gmra.mxu3 %vm513_vm1, %v506_v26 }
  0x6c   : > { %1098 = vmatmul.msk.f32.gmra.mxu0 %vm513_vm1, %v507_v27  ;;  %1110 = vmatmul.msk.f32.gmra.mxu1 %vm513_vm1, %v507_v27 }
  0x6e   : > { %1122 = vmatmul.msk.f32.gmra.mxu2 %vm513_vm1, %v507_v27 }
  0x6f   : > { %1134 = vmatmul.msk.f32.gmra.mxu3 %vm513_vm1, %v507_v27  ;;  %v431_v27 = vsel %vm406_vm13, %v1499_v47, 0.0  ;;  %vm412_vm13 = vcmp.eq.s32.totalorder %v1289_v12, %v1519_v55 }
  0x74   : > { %1099 = vmatmul.msk.f32.gmra.mxu0 %vm513_vm1, %v508_v28  ;;  %1111 = vmatmul.msk.f32.gmra.mxu1 %vm513_vm1, %v508_v28 }
  0x76   : > { %1123 = vmatmul.msk.f32.gmra.mxu2 %vm513_vm1, %v508_v28 }
  0x77   : > { %1135 = vmatmul.msk.f32.gmra.mxu3 %vm513_vm1, %v508_v28  ;;  %v477_v28 = vsel %vm452_vm14, %v1503_v48, 0.0  ;;  %vm458_vm14 = vcmp.eq.s32.totalorder %v1289_v12, %v1523_v56  ;;  %v437_v56 = vsel %vm412_vm13, %v1538_v62, 0.0 }
  0x78   : > { %v1610_v37 = vadd.f32 %v477_v28, %v431_v27 }
  0x7c   : > { %1100 = vmatmul.msk.f32.gmra.mxu0 %vm513_vm1, %v509_v29  ;;  %1112 = vmatmul.msk.f32.gmra.mxu1 %vm513_vm1, %v509_v29 }
  0x7e   : > { %1124 = vmatmul.msk.f32.gmra.mxu2 %vm513_vm1, %v509_v29 }
  0x7f   : > { %1136 = vmatmul.msk.f32.gmra.mxu3 %vm513_vm1, %v509_v29 }
  0x84   : > { %1101 = vmatmul.msk.f32.gmra.mxu0 %vm513_vm1, %v510_v30  ;;  %1113 = vmatmul.msk.f32.gmra.mxu1 %vm513_vm1, %v510_v30 }
  0x86   : > { %1125 = vmatmul.msk.f32.gmra.mxu2 %vm513_vm1, %v510_v30 }
  0x87   : > { %1137 = vmatmul.msk.f32.gmra.mxu3 %vm513_vm1, %v510_v30  ;;  %v475_v30 = vsel %vm450_vm0, %v1540_v63, 0.0  ;;  %vm459_vm0 = vcmp.eq.s32.totalorder %v1289_v12, %v1555_v6 }
  0x88   : > { %v1616_v38 = vadd.f32 %v475_v30, %v429_v23  ;;  %v484_v58 = vsel %vm459_vm0, %v1563_v15, 0.0 }
  0x8c   : > { %1102 = vmatmul.msk.f32.gmra.mxu0 %vm513_vm1, %v511_v31  ;;  %1114 = vmatmul.msk.f32.gmra.mxu1 %vm513_vm1, %v511_v31 }
  0x8e   : > { %1126 = vmatmul.msk.f32.gmra.mxu2 %vm513_vm1, %v511_v31 }
  0x8f   : > { %1138 = vmatmul.msk.f32.gmra.mxu3 %vm513_vm1, %v511_v31 }
  0x94   : > { %1103 = vmatmul.msk.f32.gmra.mxu0 %vm513_vm1, %v512_v34  ;;  %1115 = vmatmul.msk.f32.gmra.mxu1 %vm513_vm1, %v512_v34 }
  0x96   : > { %1127 = vmatmul.msk.f32.gmra.mxu2 %vm513_vm1, %v512_v34 }
  0x97   : > { %1139 = vmatmul.msk.f32.gmra.mxu3 %vm513_vm1, %v512_v34  ;;  %vm444_vm1 = vcmp.eq.s32.totalorder %v1286_v8, %v1497_v46  ;;  %v430_v34 = vsel %vm405_vm3, %v1549_v3, 0.0  ;;  %v1624_v8 = vadd.f32 %v472_v32, %v426_v18  ;;  %vm946_vm3 = vcmask 1045509  }
  0x98   : > { %v469_v53 = vsel %vm444_vm1, %v1503_v48, 0.0  ;;  %vm453_vm1 = vcmp.eq.s32.totalorder %v1292_v13, %v1509_v50  ;;  %v1626_v40 = vadd.f32 %v476_v35, %v430_v34  ;;  %v436_v50 = vsel %vm411_vm9, %v1512_v52, 0.0 }
  0x99   : > { %v1535_v59 = vadd.f32 %v469_v53, %v423_v51  ;;  %v478_v31 = vsel %vm453_vm1, %v1517_v54, 0.0  ;;  %v435_v51 = vsel %vm410_vm7, %v1499_v47, 0.0  ;;  %v481_v53 = vsel %vm456_vm8, %v1503_v48, 0.0 }
  0x9a   : > { %v1618_v39 = vadd.f32 %v478_v31, %v432_v14  ;;  %v482_v47 = vsel %vm457_vm11, %v1517_v54, 0.0  ;;  %v1656_v18 = vadd.f32 %v481_v53, %v435_v51  ;;  %vm944_vm1 = vcmask 1041409  }
  0x9b   : > { %v1660_v52 = vadd.f32 %v482_v47, %v436_v50 }
  0xb9   : > { %v567_v57 = vpop.f32.mrf.mxu0  ;;  %v620_v61 = vpop.f32.mrf.mxu1 }
  0xba   : > { %v762_v17 = vmul.f32 %v567_v57, %v1535_v59  ;;  %v763_v24 = vmul.f32 %v620_v61, %v1557_v7 }
  0xc1   : > { %v570_v19 = vpop.f32.mrf.mxu0  ;;  %v673_v20 = vpop.f32.mrf.mxu2 }
  0xc2   : > { %v766_v21 = vmul.f32 %v570_v19, %v1560_v10  ;;  %v623_v22 = vpop.f32.mrf.mxu1  ;;  %v726_v25 = vpop.f32.mrf.mxu3  ;;  %v764_v57 = vmul.f32 %v673_v20, %v1608_v36  ;;  %v1662_v19 = vadd.f32 %v480_v11, %v434_v9 }
  0xc3   : > { %v767_v26 = vmul.f32 %v623_v22, %v1565_v16  ;;  %v765_v1 = vmul.f32 %v726_v25, %v1624_v8 }
  0xc4   : > { %v810_v29 = vadd.f32 %v766_v21, %v762_v17 }
  0xc5   : > { %v819_v33 = vadd.f32 %v767_v26, %v763_v24  ;;  %v483_v26 = vsel %vm458_vm14, %v1540_v63, 0.0 }
  0xc6   : > { %v1680_v14 = vadd.f32 %v483_v26, %v437_v56 }
  0xc9   : > { %v573_v41 = vpop.f32.mrf.mxu0  ;;  %v676_v44 = vpop.f32.mrf.mxu2 }
  0xca   : > { %v770_v45 = vmul.f32 %v573_v41, %v1610_v37  ;;  %v626_v46 = vpop.f32.mrf.mxu1  ;;  %v768_v60 = vmul.f32 %v676_v44, %v1616_v38  ;;  %v729_v61 = vpop.f32.mrf.mxu3 }
  0xcb   : > { %v771_v0 = vmul.f32 %v626_v46, %v1618_v39  ;;  %v769_v2 = vmul.f32 %v729_v61, %v1626_v40 }
  0xcc   : > { %v811_v4 = vadd.f32 %v810_v29, %v770_v45  ;;  %v828_v48 = vadd.f32 %v768_v60, %v764_v57  ;;  %v438_v29 = vsel %vm413_vm15, %v1549_v3, 0.0 }
  0xcd   : > { %v820_v5 = vadd.f32 %v819_v33, %v771_v0  ;;  %v837_v17 = vadd.f32 %v769_v2, %v765_v1  ;;  %v1682_v32 = vadd.f32 %v484_v58, %v438_v29 }
  0xd1   : > { %v576_v20 = vpop.f32.mrf.mxu0  ;;  %v679_v13 = vpop.f32.mrf.mxu2 }
  0xd2   : > { %v774_v54 = vmul.f32 %v576_v20, %v1656_v18  ;;  %v629_v21 = vpop.f32.mrf.mxu1  ;;  %v772_v22 = vmul.f32 %v679_v13, %v1658_v49  ;;  %v732_v23 = vpop.f32.mrf.mxu3 }
  0xd3   : > { %v775_v24 = vmul.f32 %v629_v21, %v1660_v52  ;;  %v773_v55 = vmul.f32 %v732_v23, %v1662_v19 }
  0xd4   : > { %v812_v25 = vadd.f32 %v811_v4, %v774_v54  ;;  %v829_v27 = vadd.f32 %v828_v48, %v772_v22 }
  0xd5   : > { %v821_v28 = vadd.f32 %v820_v5, %v775_v24  ;;  %v838_v30 = vadd.f32 %v837_v17, %v773_v55 }
  0xd6   : > { %v813_v12 = vrot.slane %v812_v25, 4 }
  0xd7   : > { %v822_v6 = vrot.slane %v821_v28, 4 }
  0xd8   : > { %v814_v31 = vadd.f32 %v813_v12, %v812_v25 }
  0xd9   : > { %v823_v33 = vadd.f32 %v822_v6, %v821_v28  ;;  %v579_v34 = vpop.f32.mrf.mxu0  ;;  %v682_v62 = vpop.f32.mrf.mxu2 }
  0xda   : > { %v815_v35 = vrot.slane %v814_v31, 2  ;;  %v632_v41 = vpop.f32.mrf.mxu1  ;;  %v776_v42 = vmul.f32 %v682_v62, %v1680_v14  ;;  %v735_v43 = vpop.f32.mrf.mxu3 }
  0xdb   : > { %v824_v63 = vrot.slane %v823_v33, 2  ;;  %v777_v15 = vmul.f32 %v735_v43, %v1682_v32  ;;  %v779_v6 = vmul.f32 %v632_v41, %v1557_v7  ;;  %v778_v43 = vmul.f32 %v579_v34, %v1535_v59 }
  0xdc   : > { %v816_v3 = vadd.f32 %v815_v35, %v814_v31  ;;  %v830_v45 = vadd.f32 %v829_v27, %v776_v42 }
  0xdd   : > { %v825_v44 = vadd.f32 %v824_v63, %v823_v33  ;;  %v839_v46 = vadd.f32 %v838_v30, %v777_v15 }
  0xde   : > { %v817_v51 = vrot.slane %v816_v3, 1  ;;  %v831_v57 = vrot.slane %v830_v45, 4 }
  0xdf   : > { %v826_v53 = vrot.slane %v825_v44, 1  ;;  %v840_v60 = vrot.slane %v839_v46, 4 }
  0xe0   : > { %v832_v0 = vadd.f32 %v831_v57, %v830_v45  ;;  %v818_v47 = vadd.f32 %v817_v51, %v816_v3 }
  0xe1   : > { %v827_v61 = vadd.f32 %v826_v53, %v825_v44  ;;  %v582_v50 = vpop.f32.mrf.mxu0  ;;  %v841_v1 = vadd.f32 %v840_v60, %v839_v46  ;;  %v685_v2 = vpop.f32.mrf.mxu2 }
  0xe2   : > { %v635_v4 = vpop.f32.mrf.mxu1  ;;  %v833_v5 = vrot.slane %v832_v0, 2  ;;  %v738_v9 = vpop.f32.mrf.mxu3  ;;  %v782_v3 = vmul.f32 %v582_v50, %v1560_v10 }
  0xe3   : > { %v930_v48 = vrot.slane %v827_v61, 4  ;;  %v842_v11 = vrot.slane %v841_v1, 2  ;;  %v783_v12 = vmul.f32 %v635_v4, %v1565_v16  ;;  %v781_v57 = vmul.f32 %v738_v9, %v1624_v8 }
  0xe4   : > { %v834_v20 = vadd.f32 %v833_v5, %v832_v0  ;;  %v846_v41 = vadd.f32 %v782_v3, %v778_v43 }
  0xe5   : > { %v1687_v17 = vsel %vm936_vm2, %v818_v47, %v930_v48  ;;  %v843_v13 = vadd.f32 %v842_v11, %v841_v1  ;;  %v855_v33 = vadd.f32 %v783_v12, %v779_v6 }
  0xe6   : > { %v835_v54 = vrot.slane %v834_v20, 1 }
  0xe7   : > { %v844_v21 = vrot.slane %v843_v13, 1 }
  0xe8   : > { %v836_v56 = vadd.f32 %v835_v54, %v834_v20  ;;  %v780_v54 = vmul.f32 %v685_v2, %v1608_v36 }
  0xe9   : > { %v585_v22 = vpop.f32.mrf.mxu0  ;;  %v845_v23 = vadd.f32 %v844_v21, %v843_v13  ;;  %v688_v24 = vpop.f32.mrf.mxu2 }
  0xea   : > { %v638_v55 = vpop.f32.mrf.mxu1  ;;  %v741_v25 = vpop.f32.mrf.mxu3  ;;  %v786_v45 = vmul.f32 %v585_v22, %v1610_v37  ;;  %v784_v11 = vmul.f32 %v688_v24, %v1616_v38 }
  0xeb   : > { %v931_v26 = vrot.slane %v845_v23, 4  ;;  %v787_v31 = vmul.f32 %v638_v55, %v1618_v39  ;;  %v785_v51 = vmul.f32 %v741_v25, %v1626_v40 }
  0xec   : > { %v847_v61 = vadd.f32 %v846_v41, %v786_v45  ;;  %v864_v23 = vadd.f32 %v784_v11, %v780_v54 }
  0xed   : > { %v1690_v27 = vsel %vm936_vm2, %v836_v56, %v931_v26  ;;  %v856_v15 = vadd.f32 %v855_v33, %v787_v31  ;;  %v873_v34 = vadd.f32 %v785_v51, %v781_v57 }
  0xf1   : > { %v588_v28 = vpop.f32.mrf.mxu0  ;;  %v691_v29 = vpop.f32.mrf.mxu2 }
  0xf2   : > { %v641_v58 = vpop.f32.mrf.mxu1  ;;  %v744_v30 = vpop.f32.mrf.mxu3  ;;  %v790_v53 = vmul.f32 %v588_v28, %v1656_v18  ;;  %v788_v9 = vmul.f32 %v691_v29, %v1658_v49 }
  0xf3   : > { %v791_v35 = vmul.f32 %v641_v58, %v1660_v52  ;;  %v789_v60 = vmul.f32 %v744_v30, %v1662_v19 }
  0xf4   : > { %v848_v48 = vadd.f32 %v847_v61, %v790_v53  ;;  %v865_v26 = vadd.f32 %v864_v23, %v788_v9 }
  0xf5   : > { %v857_v46 = vadd.f32 %v856_v15, %v791_v35  ;;  %v874_v20 = vadd.f32 %v873_v34, %v789_v60 }
  0xf6   : > { %v849_v22 = vrot.slane %v848_v48, 4 }
  0xf7   : > { %v858_v0 = vrot.slane %v857_v46, 4 }
  0xf8   : > { %v850_v12 = vadd.f32 %v849_v22, %v848_v48 }
  0xf9   : > { %v591_v62 = vpop.f32.mrf.mxu0  ;;  %v694_v63 = vpop.f32.mrf.mxu2  ;;  %v859_v13 = vadd.f32 %v858_v0, %v857_v46 }
  0xfa   : > { %v644_v42 = vpop.f32.mrf.mxu1  ;;  %v747_v44 = vpop.f32.mrf.mxu3  ;;  %v792_v55 = vmul.f32 %v694_v63, %v1680_v14  ;;  %v794_v31 = vmul.f32 %v591_v62, %v1535_v59  ;;  %v851_v63 = vrot.slane %v850_v12, 2 }
  0xfb   : > { %v793_v50 = vmul.f32 %v747_v44, %v1682_v32  ;;  %v860_v25 = vrot.slane %v859_v13, 2  ;;  %v795_v3 = vmul.f32 %v644_v42, %v1557_v7 }
  0xfc   : > { %v866_v24 = vadd.f32 %v865_v26, %v792_v55 }
  0xfd   : > { %v875_v21 = vadd.f32 %v874_v20, %v793_v50  ;;  %v861_v33 = vadd.f32 %v860_v25, %v859_v13 }
  0xfe   : > { %v867_v44 = vrot.slane %v866_v24, 4 }
  0xff   : > { %v876_v28 = vrot.slane %v875_v21, 4  ;;  %v862_v46 = vrot.slane %v861_v33, 1 }
 0x100   : > { %v868_v0 = vadd.f32 %v867_v44, %v866_v24 }
 0x101   : > { %v594_v1 = vpop.f32.mrf.mxu0  ;;  %v697_v4 = vpop.f32.mrf.mxu2  ;;  %v877_v35 = vadd.f32 %v876_v28, %v875_v21  ;;  %v863_v42 = vadd.f32 %v862_v46, %v861_v33 }
 0x102   : > { %v647_v47 = vpop.f32.mrf.mxu1  ;;  %v750_v5 = vpop.f32.mrf.mxu3  ;;  %v798_v2 = vmul.f32 %v594_v1, %v1560_v10  ;;  %v796_v11 = vmul.f32 %v697_v4, %v1608_v36  ;;  %v869_v13 = vrot.slane %v868_v0, 2 }
 0x103   : > { %v799_v29 = vmul.f32 %v647_v47, %v1565_v16  ;;  %v878_v53 = vrot.slane %v877_v35, 2  ;;  %v852_v16 = vadd.f32 %v851_v63, %v850_v12  ;;  %v797_v54 = vmul.f32 %v750_v5, %v1624_v8 }
 0x104   : > { %v882_v45 = vadd.f32 %v798_v2, %v794_v31  ;;  %v932_v21 = vrot.slane %v863_v42, 4  ;;  %v870_v4 = vadd.f32 %v869_v13, %v868_v0 }
 0x105   : > { %v891_v51 = vadd.f32 %v799_v29, %v795_v3  ;;  %v879_v34 = vadd.f32 %v878_v53, %v877_v35  ;;  %v853_v48 = vrot.slane %v852_v16, 1 }
 0x106   : > { %v871_v35 = vrot.slane %v870_v4, 1 }
 0x107   : > { %v880_v23 = vrot.slane %v879_v34, 1 }
 0x109   : > { %v597_v56 = vpop.f32.mrf.mxu0  ;;  %v700_v58 = vpop.f32.mrf.mxu2 }
 0x10a   : > { %v650_v30 = vpop.f32.mrf.mxu1  ;;  %v753_v6 = vpop.f32.mrf.mxu3  ;;  %v802_v43 = vmul.f32 %v597_v56, %v1610_v37  ;;  %v854_v56 = vadd.f32 %v853_v48, %v852_v16 }
 0x10b   : > { %v803_v15 = vmul.f32 %v650_v30, %v1618_v39  ;;  %v800_v39 = vmul.f32 %v700_v58, %v1616_v38  ;;  %v801_v50 = vmul.f32 %v753_v6, %v1626_v40  ;;  %v881_v6 = vadd.f32 %v880_v23, %v879_v34 }
 0x10c   : > { %v883_v59 = vadd.f32 %v882_v45, %v802_v43 }
 0x10d   : > { %v892_v60 = vadd.f32 %v891_v51, %v803_v15  ;;  %v900_v22 = vadd.f32 %v800_v39, %v796_v11  ;;  %v909_v55 = vadd.f32 %v801_v50, %v797_v54  ;;  %v933_v3 = vrot.slane %v881_v6, 4 }
 0x10e   : > { %v872_v51 = vadd.f32 %v871_v35, %v870_v4 }
 0x111   : > { %v600_v41 = vpop.f32.mrf.mxu0  ;;  %v703_v62 = vpop.f32.mrf.mxu2 }
 0x112   : > { %v806_v10 = vmul.f32 %v600_v41, %v1656_v18  ;;  %v653_v57 = vpop.f32.mrf.mxu1  ;;  %v756_v61 = vpop.f32.mrf.mxu3  ;;  %v804_v18 = vmul.f32 %v703_v62, %v1658_v49  ;;  %v940_v62 = vsel %vm936_vm2, %v872_v51, %v933_v3 }
 0x113   : > { %v807_v37 = vmul.f32 %v653_v57, %v1660_v52  ;;  %v805_v52 = vmul.f32 %v756_v61, %v1662_v19  ;;  %v939_v19 = vsel %vm936_vm2, %v854_v56, %v932_v21 }
 0x114   : > { %v884_v7 = vadd.f32 %v883_v59, %v806_v10  ;;  %v901_v26 = vadd.f32 %v900_v22, %v804_v18  ;;  %v943_v29 = vrot.slane %v939_v19, 7 }
 0x115   : > { %v893_v1 = vadd.f32 %v892_v60, %v807_v37  ;;  %v910_v58 = vadd.f32 %v909_v55, %v805_v52  ;;  %v953_v37 = vrot.slane %v940_v62, 7 }
 0x116   : > { %v885_v47 = vrot.slane %v884_v7, 4  ;;  %v945_v46 = vsel %vm944_vm1, %v943_v29, %v1687_v17 }
 0x117   : > { %v894_v20 = vrot.slane %v893_v1, 4  ;;  %v947_v16 = vsel %vm946_vm3, %v943_v29, %v945_v46 }
 0x118   : > { %v886_v9 = vadd.f32 %v885_v47, %v884_v7 }
 0x119   : > { %v895_v38 = vadd.f32 %v894_v20, %v893_v1  ;;  %v706_v40 = vpop.f32.mrf.mxu2  ;;  %v954_v1 = vsel %vm944_vm1, %v953_v37, %v1690_v27 }
 0x11a   : > { %v887_v25 = vrot.slane %v886_v9, 2  ;;  %v808_v36 = vmul.f32 %v706_v40, %v1680_v14  ;;  %v759_v49 = vpop.f32.mrf.mxu3  ;;  %v955_v47 = vsel %vm946_vm3, %v953_v37, %v954_v1 }
 0x11b   : > { %v896_v28 = vrot.slane %v895_v38, 2  ;;  %v809_v8 = vmul.f32 %v759_v49, %v1682_v32 }
 0x11c   : > { %v888_v30 = vadd.f32 %v887_v25, %v886_v9  ;;  %v902_v12 = vadd.f32 %v901_v26, %v808_v36 }
 0x11d   : > { %v897_v5 = vadd.f32 %v896_v28, %v895_v38  ;;  %v911_v24 = vadd.f32 %v910_v58, %v809_v8 }
 0x11e   : > { %v889_v31 = vrot.slane %v888_v30, 1  ;;  %v903_v33 = vrot.slane %v902_v12, 4 }
 0x11f   : > { %v898_v2 = vrot.slane %v897_v5, 1  ;;  %v912_v43 = vrot.slane %v911_v24, 4 }
 0x120   : > { %v904_v63 = vadd.f32 %v903_v33, %v902_v12  ;;  %v890_v44 = vadd.f32 %v889_v31, %v888_v30 }
 0x121   : > { %v899_v14 = vadd.f32 %v898_v2, %v897_v5  ;;  %v913_v15 = vadd.f32 %v912_v43, %v911_v24 }
 0x122   : > { %v905_v45 = vrot.slane %v904_v63, 2 }
 0x123   : > { %v934_v32 = vrot.slane %v899_v14, 4  ;;  %v914_v41 = vrot.slane %v913_v15, 2 }
 0x124   : > { %v906_v59 = vadd.f32 %v905_v45, %v904_v63 }
 0x125   : > { %v941_v53 = vsel %vm936_vm2, %v890_v44, %v934_v32  ;;  %v915_v57 = vadd.f32 %v914_v41, %v913_v15 }
 0x126   : > { %v948_v10 = vrot.slane %v941_v53, 6  ;;  %v907_v60 = vrot.slane %v906_v59, 1 }
 0x127   : > { %v916_v61 = vrot.slane %v915_v57, 1 }
 0x128   : > { %v950_v17 = vsel %vm949_vm4, %v948_v10, %v947_v16  ;;  %v908_v42 = vadd.f32 %v907_v60, %v906_v59 }
 0x129   : > { %v952_v0 = vsel %vm951_vm5, %v948_v10, %v950_v17  ;;  %v917_v7 = vadd.f32 %v916_v61, %v915_v57 }
 0x12a   : > { %961 = vst [vmem:[%s258_s8] sm:$0x77] %v952_v0 }
 0x12b   : > { %v935_v39 = vrot.slane %v917_v7, 4 }
 0x12d   : > { %v942_v34 = vsel %vm936_vm2, %v908_v42, %v935_v39 }
 0x12e   : > { %v956_v50 = vrot.slane %v942_v34, 6 }
 0x130   : > { %v957_v48 = vsel %vm949_vm4, %v956_v50, %v955_v47 }
 0x131   : > { %v958_v11 = vsel %vm951_vm5, %v956_v50, %v957_v48 }
 0x132   : > { %962 = vst [vmem:[%s258_s8 + $0x8] sm:$0x77] %v958_v11 }
 0x133 PF: > { %s13_s16 = sadd.s32 1, %s1225_s16   ;;  %s1761_s12 = smov %s1217_s14 }
 0x134   : > { %p10_p7 = scmp.ge.s32.totalorder %s13_s16, 6   ;;  %s1762_s13 = smov %s1221_s15 }
 0x135   : > { %s1763_s14 = smov %s1766_s17  ;;  %s1764_s15 = smov %s1770_s18 }
 0x136   :  { %12 = sbr.rel (!%p10_p7) target bundleno = 3 (0x3), region = 68 }

</bundles_post_ra>
